<compile_context>
chip_gen: v7x
topology: tpu7x:2x2x1
jax: 0.10.0
libtpu: 0.0.40
codegen_flags: <defaults>
</compile_context>

<pallas_src>
import functools

import jax
import jax.numpy as jnp
import numpy as np
from jax import lax
from jax.experimental import pallas as pl
from jax.experimental.pallas import tpu as pltpu

LN_EPS = 1e-5  # PyTorch nn.LayerNorm default


def _layernorm(h, gamma, beta):
    # One-pass mean / variance: var = E[h^2] - mu^2 (halves the cross-lane reductions).
    mu = jnp.mean(h, axis=-1, keepdims=True)
    ms = jnp.mean(h * h, axis=-1, keepdims=True)
    var = jnp.maximum(ms - mu * mu, 0.0)
    return (h - mu) * lax.rsqrt(var + LN_EPS) * gamma + beta


def fnet_layer_kernel(x_ref, cs_ref, ss_ref, wr_ref,
                      g1_ref, be1_ref, g2_ref, be2_ref,
                      w1t_ref, fb1_ref, w2_ref, fb2_ref,
                      o_ref):
    """One grid step = TB folded batch elements as a [R, D] slab (R = TB*S)."""
    R, D = o_ref.shape
    S = cs_ref.shape[0]
    TB = R // S
    H = w1t_ref.shape[0]
    n_chunks, h_chunk = fb1_ref.shape
    f32, bf16 = jnp.float32, jnp.bfloat16

    x_in = x_ref[...]                     # single vld pass over the input slab
    x = x_in.astype(f32)                  # f32 for residuals / LayerNorm
    xb = x_in.astype(bf16)                # bf16 copy for the MXU

    # --- FourierLayer(1, 2): Re(FFT_D(FFT_S(x))) = Cs x Cd - Ss x Sd ------------
    # d_model-axis cos/sin DFT fused into one matmul against W_right = [Cd | Sd].
    y = jnp.dot(xb, wr_ref[...], preferred_element_type=f32)          # [R, 2D] f32
    yc = y[:, :D].astype(bf16)            # Re(FFT_D(x))   (lane-aligned slice)
    ys = y[:, D:].astype(bf16)            # -Im(FFT_D(x))

    if TB == 1:
        new_x = (jnp.dot(cs_ref[...], yc, preferred_element_type=f32)
                 - jnp.dot(ss_ref[...], ys, preferred_element_type=f32))
    else:
        # Seq-axis DFT per folded batch element as a batched matmul:
        # TB*S^2*D FLOPs (vs TB^2*S^2*D for the old kron block-diagonal form).
        yc3 = yc.reshape(TB, S, D)
        ys3 = ys.reshape(TB, S, D)
        cs_b = jnp.broadcast_to(cs_ref[...], (TB, S, S))
        ss_b = jnp.broadcast_to(ss_ref[...], (TB, S, S))
        new_x = (jnp.einsum("bst,btd->bsd", cs_b, yc3, preferred_element_type=f32)
                 - jnp.einsum("bst,btd->bsd", ss_b, ys3, preferred_element_type=f32))
        new_x = new_x.reshape(R, D)

    # --- residual (dropout == identity in eval) + LayerNorm1 --------------------
    h = _layernorm(x + new_x, g1_ref[...], be1_ref[...])              # [R, D] f32
    hb = h.astype(bf16)

    # --- FeedForward: Linear(D, 4D) -> ReLU -> Linear(4D, D), chunked over H ----
    # W1 is stored transposed [H, D]; contract d_model with an NT matmul so the
    # hidden-dim chunk is a sublane (second-minor) slice of both W1^T and W2.
    dn = (((1,), (1,)), ((), ()))         # [R,D] x [*,D] -> [R,*]
    # TODO(synk): inner FFN dropout omitted (eval-mode identity).
    if n_chunks == 1:
        t = lax.dot_general(hb, w1t_ref[...], dn,
                            preferred_element_type=f32) + fb1_ref[...]
        t = jnp.maximum(t, 0.0).astype(bf16)
        ff = jnp.dot(t, w2_ref[...], preferred_element_type=f32)
    else:
        def ffn_chunk(c, acc):
            off = pl.multiple_of(c * h_chunk, h_chunk)
            w1c = w1t_ref[pl.ds(off, h_chunk), :]                     # [hc, D]
            t = (lax.dot_general(hb, w1c, dn, preferred_element_type=f32)
                 + fb1_ref[pl.ds(c, 1), :])                           # [R, hc]
            t = jnp.maximum(t, 0.0).astype(bf16)
            return acc + jnp.dot(t, w2_ref[pl.ds(off, h_chunk), :],
                                 preferred_element_type=f32)
        ff = lax.fori_loop(0, n_chunks, ffn_chunk, jnp.zeros((R, D), f32))
    ff = ff + fb2_ref[...]

    # --- residual + LayerNorm2 ---------------------------------------------------
    o_ref[...] = _layernorm(h + ff, g2_ref[...], be2_ref[...]).astype(o_ref.dtype)


def _dft_matrices(n, dtype=jnp.float32):
    k = np.arange(n)
    ang = 2.0 * np.pi * np.outer(k, k) / n
    return jnp.asarray(np.cos(ang), dtype), jnp.asarray(np.sin(ang), dtype)


def _is_megacore():
    """Only v7x has 2 TensorCores per chip; v5e/v6e grid steps execute serially."""
    try:
        return "v7" in jax.devices()[0].device_kind.lower()
    except Exception:
        return False


def _physical_vmem_bytes():
    try:
        return int(pltpu.get_tpu_info().vmem_capacity_bytes)
    except Exception:
        return 64 * 1024 * 1024   # conservative (v7x per-TC size)


def _pick_block_b(B, S, *, multi_step, target_rows=256, max_rows=2048):
    """Fold batch so each grid step is a [tb*S, D] slab: rows >= target_rows and
    256-aligned where possible (v6e/v7x MXU is 256-wide), capped for VMEM.  The
    '>=2 grid steps' split is only applied on multi-TensorCore chips (v7x)."""
    divs = [t for t in range(1, B + 1)
            if B % t == 0 and ((t * S) % 8 == 0 or t == B)]
    cands = [t for t in divs if t * S <= max_rows] or divs

    def key(t):
        r = t * S
        if r >= target_rows:
            return (0, 0 if r % 256 == 0 else 1, r)   # smallest aligned r >= target
        return (1, 0, -r)                              # else: largest r available

    tb = min(cands, key=key)
    if multi_step and tb == B and B > 1:
        smaller = [t for t in divs if t < B]
        if smaller:
            tb = min(smaller, key=key)
    return tb


def _pick_h_chunk(H, cap=1024):
    """Largest 128-multiple divisor of H that is <= cap (keeps the f32 FFN
    activation ~[R, cap] instead of [R, H]); fall back to the full H."""
    if H <= cap:
        return H
    for c in range(cap - cap % 128, 127, -128):
        if H % c == 0:
            return c
    return H


def _vmem_limit_bytes(R, S, D, H, hc, tb, io_bytes):
    """Per-step footprint: single-buffered weights + double-buffered I/O + f32 temps."""
    mib = 1 << 20
    weights = (2 * S * S + D * (2 * D) + 2 * H * D) * 2 + (H + 5 * D) * 4
    io = 2 * R * D * io_bytes * 2                         # x + out, double-buffered
    temps = (R * 2 * D * 4                                # y (f32)
             + 2 * R * D * 2                              # yc / ys (bf16)
             + (2 * tb * S * S * 2 if tb > 1 else 0)      # broadcast Cs/Ss (bf16)
             + 5 * R * D * 4                              # new_x, h, residuals, ff acc
             + R * hc * (4 + 2))                          # FFN chunk activation
    est = int(1.4 * (weights + io + temps)) + 8 * mib
    cap = int(0.9 * _physical_vmem_bytes())
    return max(32 * mib, min(est, cap))


@functools.partial(jax.jit, static_argnames=("block_b", "h_chunk"))
def fnet_layer(x, params, *, block_b=None, h_chunk=None):
    B, S, D = x.shape
    H = params["w1t"].shape[0]
    tb = _pick_block_b(B, S, multi_step=_is_megacore()) if block_b is None else block_b
    assert B % tb == 0
    assert S % 8 == 0 or tb == 1, "seq length must be 8-aligned to fold batch"
    nblk = B // tb
    R = tb * S
    hc = _pick_h_chunk(H) if h_chunk is None else h_chunk
    assert H % hc == 0
    n_chunks = H // hc

    # Flatten (batch, seq) into rows: free reshape, lane-dense 2-D blocks.
    x2 = x.reshape(B * S, D)
    fb1c = params["fb1"].reshape(n_chunks, hc)            # free row-major reshape

    # Constant operands: fetched once, single-buffered (never re-streamed).
    const = lambda shape: pl.BlockSpec(shape, lambda i: (0,) * len(shape),
                                       pipeline_mode=pl.Buffered(1))

    out2 = pl.pallas_call(
        fnet_layer_kernel,
        out_shape=jax.ShapeDtypeStruct((B * S, D), x.dtype),
        grid_spec=pltpu.PrefetchScalarGridSpec(
            num_scalar_prefetch=0,
            grid=(nblk,),
            in_specs=[
                pl.BlockSpec((R, D), lambda i: (i, 0)),   # folded x slab
                const((S, S)), const((S, S)),             # Cs, Ss (bf16)
                const((D, 2 * D)),                        # [Cd | Sd] (bf16)
                const((1, D)), const((1, D)),             # LN1 gamma, beta
                const((1, D)), const((1, D)),             # LN2 gamma, beta
                const((H, D)), const((n_chunks, hc)),     # FFN W1^T, b1 (chunked)
                const((H, D)), const((1, D)),             # FFN W2, b2
            ],
            out_specs=pl.BlockSpec((R, D), lambda i: (i, 0)),
        ),
        compiler_params=pltpu.CompilerParams(
            dimension_semantics=("parallel",),            # megacore over batch chunks
            vmem_limit_bytes=_vmem_limit_bytes(R, S, D, H, hc, tb, x.dtype.itemsize),
        ),
    )(x2, params["cs"], params["ss"], params["wr"],
      params["g1"], params["be1"], params["g2"], params["be2"],
      params["w1t"], fb1c, params["w2"], params["fb2"])

    # attn_mask is unused by FNet; matches (self.norm2(x), None).
    return out2.reshape(B, S, D), None


def make_params(key, S, D, H):
    ks = jax.random.split(key, 8)
    cs, ss = _dft_matrices(S)
    cd, sd = _dft_matrices(D)
    bf16 = jnp.bfloat16
    return {
        # Fourier DFT operands, pre-cast to bf16 ONCE (not on the forward path).
        "cs": cs.astype(bf16), "ss": ss.astype(bf16),
        "wr": jnp.concatenate([cd, sd], axis=1).astype(bf16),        # [D, 2D] = [Cd|Sd]
        # LayerNorm affine params (perturbed so they are actually exercised).
        "g1": 1.0 + 0.1 * jax.random.normal(ks[4], (1, D), jnp.float32),
        "be1": 0.1 * jax.random.normal(ks[5], (1, D), jnp.float32),
        "g2": 1.0 + 0.1 * jax.random.normal(ks[6], (1, D), jnp.float32),
        "be2": 0.1 * jax.random.normal(ks[7], (1, D), jnp.float32),
        # FeedForward weights; W1 stored transposed [H, D] for chunked NT matmuls.
        "w1t": (jax.random.normal(ks[0], (H, D), jnp.float32) * 0.05).astype(bf16),
        "fb1": jax.random.normal(ks[1], (1, H), jnp.float32) * 0.05,
        "w2": (jax.random.normal(ks[2], (H, D), jnp.float32) * 0.05).astype(bf16),
        "fb2": jax.random.normal(ks[3], (1, D), jnp.float32) * 0.05,
    }


def _bf16_round(a):
    return a.astype(jnp.bfloat16).astype(jnp.float32)


def reference(x, p, use_fft=False):
    """Pure-JAX reference of the same forward pass.

    use_fft=False: mirrors the kernel's math exactly (same bf16-rounded operands,
                   f32 accumulation) -> tight tolerance.
    use_fft=True : uses jnp.fft as the semantic anchor for the Fourier sub-layer
                   -> loose tolerance (bf16 DFT vs exact FFT).
    """
    B, S, D = x.shape
    hi = lax.Precision.HIGHEST
    x = x.astype(jnp.float32)
    if use_fft:
        new_x = jnp.fft.fft(jnp.fft.fft(x, axis=1), axis=2).real.astype(jnp.float32)
    else:
        wr = p["wr"].astype(jnp.float32)
        cs, ss = p["cs"].astype(jnp.float32), p["ss"].astype(jnp.float32)
        y = jnp.einsum("bsd,de->bse", _bf16_round(x), wr, precision=hi)
        yc, ys = _bf16_round(y[..., :D]), _bf16_round(y[..., D:])
        new_x = (jnp.einsum("st,btd->bsd", cs, yc, precision=hi)
                 - jnp.einsum("st,btd->bsd", ss, ys, precision=hi))
    h = _layernorm(x + new_x, p["g1"], p["be1"])
    w1t, w2 = p["w1t"].astype(jnp.float32), p["w2"].astype(jnp.float32)
    ff = jnp.einsum("bsd,hd->bsh", _bf16_round(h), w1t, precision=hi) + p["fb1"]
    ff = jnp.maximum(ff, 0.0)
    ff = jnp.einsum("bsh,hd->bsd", _bf16_round(ff), w2, precision=hi) + p["fb2"]
    return _layernorm(h + ff, p["g2"], p["be2"])


if __name__ == "__main__":
    # Small shapes for the correctness run (d_model a multiple of 128 -> lane-dense).
    B, S, D = 8, 8, 128          # batch, seq, d_model
    H = 4 * D                    # FFN hidden

    key = jax.random.PRNGKey(0)
    kx, kp = jax.random.split(key)
    x = jax.random.normal(kx, (B, S, D), jnp.float32)
    params = make_params(kp, S, D, H)

    ref = reference(x, params, use_fft=False)

    # Auto block sizing: folds batch (TB > 1) -> exercises the batched seq-DFT path.
    out, _ = fnet_layer(x, params)
    out = jax.block_until_ready(out)
    np.testing.assert_allclose(np.asarray(out), np.asarray(ref), rtol=1e-2, atol=1e-2)

    # Loose semantic anchor: Fourier sub-layer against an actual FFT (only bf16
    # rounding of the DFT/FFN operands separates kernel and reference).
    ref_fft = reference(x, params, use_fft=True)
    np.testing.assert_allclose(np.asarray(out), np.asarray(ref_fft), rtol=0.25, atol=0.25)

    # TB == 1 path (per-batch-element grid steps) + chunked-FFN fori path.
    out2, _ = fnet_layer(x, params, block_b=1, h_chunk=256)
    out2 = jax.block_until_ready(out2)
    np.testing.assert_allclose(np.asarray(out2), np.asarray(ref), rtol=1e-2, atol=1e-2)

    print("KERNEL_OK")
</pallas_src>

<mosaic_0001>
module attributes {stable_mosaic.version = 11 : i64} {
  func.func @fnet_layer_kernel(%arg0: i32, %arg1: memref<64x128xf32, #tpu.memory_space<vmem>>, %arg2: memref<8x8xbf16, #tpu.memory_space<vmem>>, %arg3: memref<8x8xbf16, #tpu.memory_space<vmem>>, %arg4: memref<128x256xbf16, #tpu.memory_space<vmem>>, %arg5: memref<1x128xf32, #tpu.memory_space<vmem>>, %arg6: memref<1x128xf32, #tpu.memory_space<vmem>>, %arg7: memref<1x128xf32, #tpu.memory_space<vmem>>, %arg8: memref<1x128xf32, #tpu.memory_space<vmem>>, %arg9: memref<512x128xbf16, #tpu.memory_space<vmem>>, %arg10: memref<1x512xf32, #tpu.memory_space<vmem>>, %arg11: memref<512x128xbf16, #tpu.memory_space<vmem>>, %arg12: memref<1x128xf32, #tpu.memory_space<vmem>>, %arg13: memref<64x128xf32, #tpu.memory_space<vmem>>) attributes {dimension_semantics = [#tpu.dimension_semantics<parallel>], iteration_bounds = array<i64: 1>, scalar_prefetch = 0 : i64, scratch_operands = 0 : i64, tpu.core_type = #tpu.core_type<tc>, window_params = [{transform_indices = @transform_0, window_bounds = array<i64: 64, 128>}, {pipeline_mode = #tpu.pipeline_mode<synchronous>, transform_indices = @transform_1, window_bounds = array<i64: 8, 8>}, {pipeline_mode = #tpu.pipeline_mode<synchronous>, transform_indices = @transform_2, window_bounds = array<i64: 8, 8>}, {pipeline_mode = #tpu.pipeline_mode<synchronous>, transform_indices = @transform_3, window_bounds = array<i64: 128, 256>}, {pipeline_mode = #tpu.pipeline_mode<synchronous>, transform_indices = @transform_4, window_bounds = array<i64: 1, 128>}, {pipeline_mode = #tpu.pipeline_mode<synchronous>, transform_indices = @transform_5, window_bounds = array<i64: 1, 128>}, {pipeline_mode = #tpu.pipeline_mode<synchronous>, transform_indices = @transform_6, window_bounds = array<i64: 1, 128>}, {pipeline_mode = #tpu.pipeline_mode<synchronous>, transform_indices = @transform_7, window_bounds = array<i64: 1, 128>}, {pipeline_mode = #tpu.pipeline_mode<synchronous>, transform_indices = @transform_8, window_bounds = array<i64: 512, 128>}, {pipeline_mode = #tpu.pipeline_mode<synchronous>, transform_indices = @transform_9, window_bounds = array<i64: 1, 512>}, {pipeline_mode = #tpu.pipeline_mode<synchronous>, transform_indices = @transform_10, window_bounds = array<i64: 512, 128>}, {pipeline_mode = #tpu.pipeline_mode<synchronous>, transform_indices = @transform_11, window_bounds = array<i64: 1, 128>}, {transform_indices = @transform_12, window_bounds = array<i64: 64, 128>}]} {
    %c0 = arith.constant 0 : index
    %c0_0 = arith.constant 0 : index
    %0 = vector.load %arg1[%c0, %c0_0] : memref<64x128xf32, #tpu.memory_space<vmem>>, vector<64x128xf32>
    %1 = arith.truncf %0 : vector<64x128xf32> to vector<64x128xbf16>
    %c0_1 = arith.constant 0 : index
    %c0_2 = arith.constant 0 : index
    %2 = vector.load %arg4[%c0_1, %c0_2] : memref<128x256xbf16, #tpu.memory_space<vmem>>, vector<128x256xbf16>
    %cst = arith.constant dense<0.000000e+00> : vector<64x256xf32>
    %3 = tpu.matmul %1, %2, %cst {dimension_numbers = #tpu.dot_dimension_numbers<[1], [0], [0], [1], [0, 0, 1, 1], [], []>} : vector<64x128xbf16>, vector<128x256xbf16>, vector<64x256xf32> -> vector<64x256xf32>
    %4 = vector.extract_strided_slice %3 {offsets = [0, 0], sizes = [64, 128], strides = [1, 1]} : vector<64x256xf32> to vector<64x128xf32>
    %5 = arith.truncf %4 : vector<64x128xf32> to vector<64x128xbf16>
    %6 = vector.extract_strided_slice %3 {offsets = [0, 128], sizes = [64, 128], strides = [1, 1]} : vector<64x256xf32> to vector<64x128xf32>
    %7 = arith.truncf %6 : vector<64x128xf32> to vector<64x128xbf16>
    %8 = vector.shape_cast %5 : vector<64x128xbf16> to vector<8x8x128xbf16>
    %9 = vector.shape_cast %7 : vector<64x128xbf16> to vector<8x8x128xbf16>
    %c0_3 = arith.constant 0 : index
    %c0_4 = arith.constant 0 : index
    %10 = vector.load %arg2[%c0_3, %c0_4] : memref<8x8xbf16, #tpu.memory_space<vmem>>, vector<8x8xbf16>
    %11 = vector.shape_cast %10 : vector<8x8xbf16> to vector<1x8x8xbf16>
    %12 = vector.broadcast %11 : vector<1x8x8xbf16> to vector<8x8x8xbf16>
    %c0_5 = arith.constant 0 : index
    %c0_6 = arith.constant 0 : index
    %13 = vector.load %arg3[%c0_5, %c0_6] : memref<8x8xbf16, #tpu.memory_space<vmem>>, vector<8x8xbf16>
    %14 = vector.shape_cast %13 : vector<8x8xbf16> to vector<1x8x8xbf16>
    %15 = vector.broadcast %14 : vector<1x8x8xbf16> to vector<8x8x8xbf16>
    "tpu.trace_start"() <{level = 10 : i32, message = "bst,btd->bsd"}> : () -> ()
    %cst_7 = arith.constant dense<0.000000e+00> : vector<8x8x128xf32>
    %16 = tpu.matmul %12, %8, %cst_7 {dimension_numbers = #tpu.dot_dimension_numbers<[2], [1], [1], [2], [0, 0, 0, 1, 1, 2], [0], [0]>} : vector<8x8x8xbf16>, vector<8x8x128xbf16>, vector<8x8x128xf32> -> vector<8x8x128xf32>
    %cst_8 = arith.constant dense<0.000000e+00> : vector<8x8x128xf32>
    %17 = tpu.matmul %15, %9, %cst_8 {dimension_numbers = #tpu.dot_dimension_numbers<[2], [1], [1], [2], [0, 0, 0, 1, 1, 2], [0], [0]>} : vector<8x8x8xbf16>, vector<8x8x128xbf16>, vector<8x8x128xf32> -> vector<8x8x128xf32>
    "tpu.trace_stop"() : () -> ()
    %18 = arith.subf %16, %17 : vector<8x8x128xf32>
    %19 = vector.shape_cast %18 : vector<8x8x128xf32> to vector<64x128xf32>
    %20 = arith.addf %0, %19 : vector<64x128xf32>
    %c0_9 = arith.constant 0 : index
    %c0_10 = arith.constant 0 : index
    %21 = vector.load %arg5[%c0_9, %c0_10] : memref<1x128xf32, #tpu.memory_space<vmem>>, vector<1x128xf32>
    %c0_11 = arith.constant 0 : index
    %c0_12 = arith.constant 0 : index
    %22 = vector.load %arg6[%c0_11, %c0_12] : memref<1x128xf32, #tpu.memory_space<vmem>>, vector<1x128xf32>
    %cst_13 = arith.constant dense<0.000000e+00> : vector<64xf32>
    %23 = vector.multi_reduction <add>, %20, %cst_13 [1] : vector<64x128xf32> to vector<64xf32>
    %24 = vector.shape_cast %23 : vector<64xf32> to vector<64x1xf32>
    %cst_14 = arith.constant 1.280000e+02 : f32
    %25 = vector.broadcast %cst_14 : f32 to vector<64x1xf32>
    %26 = arith.divf %24, %25 : vector<64x1xf32>
    %27 = arith.mulf %20, %20 : vector<64x128xf32>
    %cst_15 = arith.constant dense<0.000000e+00> : vector<64xf32>
    %28 = vector.multi_reduction <add>, %27, %cst_15 [1] : vector<64x128xf32> to vector<64xf32>
    %29 = vector.shape_cast %28 : vector<64xf32> to vector<64x1xf32>
    %cst_16 = arith.constant 1.280000e+02 : f32
    %30 = vector.broadcast %cst_16 : f32 to vector<64x1xf32>
    %31 = arith.divf %29, %30 : vector<64x1xf32>
    %32 = arith.mulf %26, %26 : vector<64x1xf32>
    %33 = arith.subf %31, %32 : vector<64x1xf32>
    %cst_17 = arith.constant 0.000000e+00 : f32
    %34 = vector.broadcast %cst_17 : f32 to vector<64x1xf32>
    %35 = arith.maximumf %33, %34 : vector<64x1xf32>
    %36 = vector.broadcast %26 : vector<64x1xf32> to vector<64x128xf32>
    %37 = arith.subf %20, %36 : vector<64x128xf32>
    %cst_18 = arith.constant 9.99999974E-6 : f32
    %38 = vector.broadcast %cst_18 : f32 to vector<64x1xf32>
    %39 = arith.addf %35, %38 : vector<64x1xf32>
    %40 = math.rsqrt %39 : vector<64x1xf32>
    %41 = vector.broadcast %40 : vector<64x1xf32> to vector<64x128xf32>
    %42 = arith.mulf %37, %41 : vector<64x128xf32>
    %43 = vector.broadcast %21 : vector<1x128xf32> to vector<64x128xf32>
    %44 = arith.mulf %42, %43 : vector<64x128xf32>
    %45 = vector.broadcast %22 : vector<1x128xf32> to vector<64x128xf32>
    %46 = arith.addf %44, %45 : vector<64x128xf32>
    %47 = arith.truncf %46 : vector<64x128xf32> to vector<64x128xbf16>
    %c0_19 = arith.constant 0 : index
    %c0_20 = arith.constant 0 : index
    %48 = vector.load %arg9[%c0_19, %c0_20] : memref<512x128xbf16, #tpu.memory_space<vmem>>, vector<512x128xbf16>
    %cst_21 = arith.constant dense<0.000000e+00> : vector<64x512xf32>
    %49 = tpu.matmul %47, %48, %cst_21 {dimension_numbers = #tpu.dot_dimension_numbers<[1], [1], [0], [0], [0, 0, 1, 0], [], []>} : vector<64x128xbf16>, vector<512x128xbf16>, vector<64x512xf32> -> vector<64x512xf32>
    %c0_22 = arith.constant 0 : index
    %c0_23 = arith.constant 0 : index
    %50 = vector.load %arg10[%c0_22, %c0_23] : memref<1x512xf32, #tpu.memory_space<vmem>>, vector<1x512xf32>
    %51 = vector.broadcast %50 : vector<1x512xf32> to vector<64x512xf32>
    %52 = arith.addf %49, %51 : vector<64x512xf32>
    %cst_24 = arith.constant 0.000000e+00 : f32
    %53 = vector.broadcast %cst_24 : f32 to vector<64x512xf32>
    %54 = arith.maximumf %52, %53 : vector<64x512xf32>
    %55 = arith.truncf %54 : vector<64x512xf32> to vector<64x512xbf16>
    %c0_25 = arith.constant 0 : index
    %c0_26 = arith.constant 0 : index
    %56 = vector.load %arg11[%c0_25, %c0_26] : memref<512x128xbf16, #tpu.memory_space<vmem>>, vector<512x128xbf16>
    %cst_27 = arith.constant dense<0.000000e+00> : vector<64x128xf32>
    %57 = tpu.matmul %55, %56, %cst_27 {dimension_numbers = #tpu.dot_dimension_numbers<[1], [0], [0], [1], [0, 0, 1, 1], [], []>} : vector<64x512xbf16>, vector<512x128xbf16>, vector<64x128xf32> -> vector<64x128xf32>
    %c0_28 = arith.constant 0 : index
    %c0_29 = arith.constant 0 : index
    %58 = vector.load %arg12[%c0_28, %c0_29] : memref<1x128xf32, #tpu.memory_space<vmem>>, vector<1x128xf32>
    %59 = vector.broadcast %58 : vector<1x128xf32> to vector<64x128xf32>
    %60 = arith.addf %57, %59 : vector<64x128xf32>
    %61 = arith.addf %46, %60 : vector<64x128xf32>
    %c0_30 = arith.constant 0 : index
    %c0_31 = arith.constant 0 : index
    %62 = vector.load %arg7[%c0_30, %c0_31] : memref<1x128xf32, #tpu.memory_space<vmem>>, vector<1x128xf32>
    %c0_32 = arith.constant 0 : index
    %c0_33 = arith.constant 0 : index
    %63 = vector.load %arg8[%c0_32, %c0_33] : memref<1x128xf32, #tpu.memory_space<vmem>>, vector<1x128xf32>
    %cst_34 = arith.constant dense<0.000000e+00> : vector<64xf32>
    %64 = vector.multi_reduction <add>, %61, %cst_34 [1] : vector<64x128xf32> to vector<64xf32>
    %65 = vector.shape_cast %64 : vector<64xf32> to vector<64x1xf32>
    %cst_35 = arith.constant 1.280000e+02 : f32
    %66 = vector.broadcast %cst_35 : f32 to vector<64x1xf32>
    %67 = arith.divf %65, %66 : vector<64x1xf32>
    %68 = arith.mulf %61, %61 : vector<64x128xf32>
    %cst_36 = arith.constant dense<0.000000e+00> : vector<64xf32>
    %69 = vector.multi_reduction <add>, %68, %cst_36 [1] : vector<64x128xf32> to vector<64xf32>
    %70 = vector.shape_cast %69 : vector<64xf32> to vector<64x1xf32>
    %cst_37 = arith.constant 1.280000e+02 : f32
    %71 = vector.broadcast %cst_37 : f32 to vector<64x1xf32>
    %72 = arith.divf %70, %71 : vector<64x1xf32>
    %73 = arith.mulf %67, %67 : vector<64x1xf32>
    %74 = arith.subf %72, %73 : vector<64x1xf32>
    %cst_38 = arith.constant 0.000000e+00 : f32
    %75 = vector.broadcast %cst_38 : f32 to vector<64x1xf32>
    %76 = arith.maximumf %74, %75 : vector<64x1xf32>
    %77 = vector.broadcast %67 : vector<64x1xf32> to vector<64x128xf32>
    %78 = arith.subf %61, %77 : vector<64x128xf32>
    %cst_39 = arith.constant 9.99999974E-6 : f32
    %79 = vector.broadcast %cst_39 : f32 to vector<64x1xf32>
    %80 = arith.addf %76, %79 : vector<64x1xf32>
    %81 = math.rsqrt %80 : vector<64x1xf32>
    %82 = vector.broadcast %81 : vector<64x1xf32> to vector<64x128xf32>
    %83 = arith.mulf %78, %82 : vector<64x128xf32>
    %84 = vector.broadcast %62 : vector<1x128xf32> to vector<64x128xf32>
    %85 = arith.mulf %83, %84 : vector<64x128xf32>
    %86 = vector.broadcast %63 : vector<1x128xf32> to vector<64x128xf32>
    %87 = arith.addf %85, %86 : vector<64x128xf32>
    %c0_40 = arith.constant 0 : index
    %c0_41 = arith.constant 0 : index
    %88 = vector.load %arg13[%c0_40, %c0_41] : memref<64x128xf32, #tpu.memory_space<vmem>>, vector<64x128xf32>
    tpu.vector_store %arg13[%c0_40, %c0_41], %87 {strides = array<i32>} : memref<64x128xf32, #tpu.memory_space<vmem>>, vector<64x128xf32>,
    return
  }
  func.func @transform_0(%arg0: i32) -> (i32, i32) {
    %c0_i32 = arith.constant 0 : i32
    %c0_i32_0 = arith.constant 0 : i32
    return %arg0, %c0_i32 : i32, i32
  }
  func.func @transform_1(%arg0: i32) -> (i32, i32) {
    %c0_i32 = arith.constant 0 : i32
    %c0_i32_0 = arith.constant 0 : i32
    %c0_i32_1 = arith.constant 0 : i32
    return %c0_i32, %c0_i32_0 : i32, i32
  }
  func.func @transform_2(%arg0: i32) -> (i32, i32) {
    %c0_i32 = arith.constant 0 : i32
    %c0_i32_0 = arith.constant 0 : i32
    %c0_i32_1 = arith.constant 0 : i32
    return %c0_i32, %c0_i32_0 : i32, i32
  }
  func.func @transform_3(%arg0: i32) -> (i32, i32) {
    %c0_i32 = arith.constant 0 : i32
    %c0_i32_0 = arith.constant 0 : i32
    %c0_i32_1 = arith.constant 0 : i32
    return %c0_i32, %c0_i32_0 : i32, i32
  }
  func.func @transform_4(%arg0: i32) -> (i32, i32) {
    %c0_i32 = arith.constant 0 : i32
    %c0_i32_0 = arith.constant 0 : i32
    %c0_i32_1 = arith.constant 0 : i32
    return %c0_i32, %c0_i32_0 : i32, i32
  }
  func.func @transform_5(%arg0: i32) -> (i32, i32) {
    %c0_i32 = arith.constant 0 : i32
    %c0_i32_0 = arith.constant 0 : i32
    %c0_i32_1 = arith.constant 0 : i32
    return %c0_i32, %c0_i32_0 : i32, i32
  }
  func.func @transform_6(%arg0: i32) -> (i32, i32) {
    %c0_i32 = arith.constant 0 : i32
    %c0_i32_0 = arith.constant 0 : i32
    %c0_i32_1 = arith.constant 0 : i32
    return %c0_i32, %c0_i32_0 : i32, i32
  }
  func.func @transform_7(%arg0: i32) -> (i32, i32) {
    %c0_i32 = arith.constant 0 : i32
    %c0_i32_0 = arith.constant 0 : i32
    %c0_i32_1 = arith.constant 0 : i32
    return %c0_i32, %c0_i32_0 : i32, i32
  }
  func.func @transform_8(%arg0: i32) -> (i32, i32) {
    %c0_i32 = arith.constant 0 : i32
    %c0_i32_0 = arith.constant 0 : i32
    %c0_i32_1 = arith.constant 0 : i32
    return %c0_i32, %c0_i32_0 : i32, i32
  }
  func.func @transform_9(%arg0: i32) -> (i32, i32) {
    %c0_i32 = arith.constant 0 : i32
    %c0_i32_0 = arith.constant 0 : i32
    %c0_i32_1 = arith.constant 0 : i32
    return %c0_i32, %c0_i32_0 : i32, i32
  }
  func.func @transform_10(%arg0: i32) -> (i32, i32) {
    %c0_i32 = arith.constant 0 : i32
    %c0_i32_0 = arith.constant 0 : i32
    %c0_i32_1 = arith.constant 0 : i32
    return %c0_i32, %c0_i32_0 : i32, i32
  }
  func.func @transform_11(%arg0: i32) -> (i32, i32) {
    %c0_i32 = arith.constant 0 : i32
    %c0_i32_0 = arith.constant 0 : i32
    %c0_i32_1 = arith.constant 0 : i32
    return %c0_i32, %c0_i32_0 : i32, i32
  }
  func.func @transform_12(%arg0: i32) -> (i32, i32) {
    %c0_i32 = arith.constant 0 : i32
    %c0_i32_0 = arith.constant 0 : i32
    return %arg0, %c0_i32 : i32, i32
  }
}

</mosaic_0001>

<bundles_post_ra>
// kernel: fnet_layer.1
= control target key start
LH: loop header
LB: loop body
LE: loop exit
PB: predicated region body
PF: predicated region fallthrough
CT: control target
= control target key end

     0   :  { %17 = vsyncpa [#allocation3], 0  ;;  %s3528_s0 = inlined_call_operand.hbm [shape: f32[64,128], index: 0, kind: input, shape index: {}]   ;;  %s3529_s1 = inlined_call_operand.vmem [shape: bf16[8,8], index: 1, kind: input, shape index: {}]   ;;  %s3530_s2 = inlined_call_operand.vmem [shape: bf16[8,8], index: 2, kind: input, shape index: {}]   ;;  %s3531_s3 = inlined_call_operand.hbm [shape: bf16[128,256], index: 3, kind: input, shape index: {}]   ;;  %s3532_s4 = inlined_call_operand.vmem [shape: f32[1,128], index: 4, kind: input, shape index: {}]   ;;  %s3533_s5 = inlined_call_operand.vmem [shape: f32[1,128], index: 5, kind: input, shape index: {}]   ;;  %s3534_s6 = inlined_call_operand.vmem [shape: f32[1,128], index: 6, kind: input, shape index: {}]   ;;  %s3535_s7 = inlined_call_operand.hbm [shape: f32[1,128], index: 7, kind: input, shape index: {}]   ;;  %s3536_s8 = inlined_call_operand.hbm [shape: bf16[512,128], index: 8, kind: input, shape index: {}]   ;;  %s3537_s9 = inlined_call_operand.vmem [shape: f32[1,512], index: 9, kind: input, shape index: {}]   ;;  %s3538_s10 = inlined_call_operand.hbm [shape: bf16[512,128], index: 10, kind: input, shape index: {}]   ;;  %s3539_s11 = inlined_call_operand.vmem [shape: f32[1,128], index: 11, kind: input, shape index: {}]   ;;  %s3540_s12 = inlined_call_operand.hbm [shape: f32[64,128], index: 12, kind: output, shape index: {}]  }
   0x1   :  { %18 = vsyncpa [#allocation6], 0 }
   0x2   :  { %19 = vsyncpa [#allocation9], 0 }
   0x3   :  { %20 = vsyncpa [#allocation4], 0  ;;  %s2903_s21 = smov [#allocation5]   ;;  %s2904_s23 = smov [#allocation8]  }
   0x4   :  { %s42_s22 = sshll.u32 %s2903_s21, 4  ;;  %s70_s24 = sshll.u32 %s2904_s23, 4  ;;  %s43_s22 = int_to_ptr.vmem [resolvable:$true] %s42_s22  ;;  %s2981_s24 = int_to_ptr.vmem [resolvable:$true] %s70_s24 }
   0x5   :  { %s2763_s27 = scalar_lea.hbm %s3531_s3, 2048 }
   0x6   :  { %p2764_p0 = scmp.ne.s32.totalorder %s3531_s3, %s2763_s27  ;;  %p2767_p1 = scmp.lt.u32.totalorder %s2763_s27, %s3531_s3 }
   0x8   :  { %p2769_p2 = pnand %p2767_p1, %p2764_p0 }
   0xa   :  { %2772 = shalt.err (!%p2769_p2)
}
   0xb   :  { %s2773_s14 = scalar_lea.vmem %s43_s22, 2048  ;;  %p2778_p4 = scmp.lt.s32.totalorder %s43_s22, %s43_s22 }
   0xc   :  { %p2774_p3 = scmp.ne.s32.totalorder %s43_s22, %s2773_s14  ;;  %p2779_p5 = scmp.lt.s32.totalorder %s2773_s14, %s2773_s14 }
   0xe   :  { %p2780_p6 = por %p2779_p5, %p2778_p4 }
  0x10   :  { %p2781_p7 = pnand %p2780_p6, %p2774_p3 }
  0x12   :  { %2784 = shalt.err (!%p2781_p7)
}
  0x13   :  { %s2905_s15 = smov 128   ;;  %s2906_s16 = smov 8  }
  0x14   :  { %48 = dma.hbm_to_vmem [thread:$0]  %s3531_s3, 2048, %s43_s22, [#allocation6], %s2905_s15, %s2905_s15, %s2906_s16  }
  0x15   :  { %s2785_s21 = scalar_lea.hbm %s3536_s8, 4096 }
  0x16   :  { %p2786_p8 = scmp.ne.s32.totalorder %s3536_s8, %s2785_s21  ;;  %p2789_p9 = scmp.lt.u32.totalorder %s2785_s21, %s3536_s8 }
  0x18   :  { %p2791_p10 = pnand %p2789_p9, %p2786_p8 }
  0x1a   :  { %2794 = shalt.err (!%p2791_p10)
}
  0x1b   :  { %s2795_s28 = scalar_lea.vmem %s2981_s24, 4096  ;;  %p2800_p12 = scmp.lt.s32.totalorder %s2981_s24, %s2981_s24 }
  0x1c   :  { %p2796_p11 = scmp.ne.s32.totalorder %s2981_s24, %s2795_s28  ;;  %p2801_p13 = scmp.lt.s32.totalorder %s2795_s28, %s2795_s28 }
  0x1e   :  { %p2802_p0 = por %p2801_p13, %p2800_p12 }
  0x20   :  { %p2803_p1 = pnand %p2802_p0, %p2796_p11 }
  0x22   :  { %2806 = shalt.err (!%p2803_p1)
}
  0x23   :  { %s2907_s3 = smov 64   ;;  %s2908_s22 = smov 4  }
  0x24   :  { %76 = dma.hbm_to_vmem [thread:$0]  %s3536_s8, 4096, %s2981_s24, [#allocation9], %s2907_s3, %s2907_s3, %s2908_s22  }
  0x25   :  { %s2909_s13 = smov [#allocation2]   ;;  %s2910_s17 = smov [#allocation7]  }
  0x26   :  { %s26_s14 = sshll.u32 %s2909_s13, 4  ;;  %s61_s18 = sshll.u32 %s2910_s17, 4  ;;  %s27_s14 = int_to_ptr.vmem [resolvable:$true] %s26_s14  ;;  %s62_s18 = int_to_ptr.vmem [resolvable:$true] %s61_s18 }
  0x27   :  { %s2807_s21 = scalar_lea.hbm %s3528_s0, 1024 }
  0x28   :  { %p2808_p2 = scmp.ne.s32.totalorder %s3528_s0, %s2807_s21  ;;  %p2811_p3 = scmp.lt.u32.totalorder %s2807_s21, %s3528_s0 }
  0x2a   :  { %p2813_p4 = pnand %p2811_p3, %p2808_p2 }
  0x2c   :  { %2816 = shalt.err (!%p2813_p4)
}
  0x2d   :  { %s2817_s8 = scalar_lea.vmem %s27_s14, 1024  ;;  %p2822_p6 = scmp.lt.s32.totalorder %s27_s14, %s27_s14 }
  0x2e   :  { %p2818_p5 = scmp.ne.s32.totalorder %s27_s14, %s2817_s8  ;;  %p2823_p7 = scmp.lt.s32.totalorder %s2817_s8, %s2817_s8 }
  0x30   :  { %p2824_p8 = por %p2823_p7, %p2822_p6 }
  0x32   :  { %p2825_p9 = pnand %p2824_p8, %p2818_p5 }
  0x34   :  { %2828 = shalt.err (!%p2825_p9)
}
  0x35   :  { %32 = dma.hbm_to_vmem [thread:$0]  %s3528_s0, 1024, %s27_s14, [#allocation3], %s2905_s15, %s2905_s15, %s2906_s16  }
  0x36   :  { %s2829_s13 = scalar_lea.hbm %s3535_s7, 16 }
  0x37   :  { %p2830_p10 = scmp.ne.s32.totalorder %s3535_s7, %s2829_s13  ;;  %p2833_p11 = scmp.lt.u32.totalorder %s2829_s13, %s3535_s7 }
  0x39   :  { %p2835_p12 = pnand %p2833_p11, %p2830_p10 }
  0x3b   :  { %2838 = shalt.err (!%p2835_p12)
}
  0x3c   :  { %s2839_s23 = scalar_lea.vmem %s62_s18, 16  ;;  %s2843_s25 = scalar_lea.vmem %s62_s18, 32 }
  0x3d   :  { %p2840_p13 = scmp.ne.s32.totalorder %s62_s18, %s2839_s23  ;;  %p2844_p0 = scmp.lt.s32.totalorder %s62_s18, %s62_s18 }
  0x3e   :  { %p2845_p1 = scmp.lt.s32.totalorder %s2843_s25, %s2839_s23 }
  0x40   :  { %p2846_p2 = por %p2845_p1, %p2844_p0 }
  0x42   :  { %p2847_p3 = pnand %p2846_p2, %p2840_p13 }
  0x44   :  { %2850 = shalt.err (!%p2847_p3)
}
  0x45   :  { %64 = dma.hbm_to_vmem [thread:$0]  %s3535_s7, 16, %s62_s18, [#allocation6]  }
  0x46   :  { %s2911_s26 = smov [#allocation10]   ;;  %s2851_s28 = scalar_lea.hbm %s3538_s10, 4096 }
  0x47   :  { %s84_s27 = sshll.u32 %s2911_s26, 4  ;;  %p2852_p4 = scmp.ne.s32.totalorder %s3538_s10, %s2851_s28  ;;  %s85_s27 = int_to_ptr.vmem [resolvable:$true] %s84_s27 }
  0x48   :  { %p2855_p5 = scmp.lt.u32.totalorder %s2851_s28, %s3538_s10 }
  0x4a   :  { %p2857_p6 = pnand %p2855_p5, %p2852_p4 }
  0x4c   :  { %2860 = shalt.err (!%p2857_p6)
}
  0x4d   :  { %s2861_s19 = scalar_lea.vmem %s85_s27, 4096  ;;  %p2866_p8 = scmp.lt.s32.totalorder %s85_s27, %s85_s27 }
  0x4e   :  { %p2862_p7 = scmp.ne.s32.totalorder %s85_s27, %s2861_s19  ;;  %p2867_p9 = scmp.lt.s32.totalorder %s2861_s19, %s2861_s19 }
  0x50   :  { %p2868_p10 = por %p2867_p9, %p2866_p8 }
  0x52   :  { %p2869_p11 = pnand %p2868_p10, %p2862_p7 }
  0x54   :  { %2872 = shalt.err (!%p2869_p11)
}
  0x55   :  { %90 = dma.hbm_to_vmem [thread:$0]  %s3538_s10, 4096, %s85_s27, [#allocation9], %s2907_s3, %s2907_s3, %s2908_s22  }
  0x56   :  { %2895 = dma.done.wait [#allocation3], 1024  }
  0x57   :  { %2896 = vsyncadd [#allocation3], 4294966272 }
  0x58   :  { %2897 = dma.done.wait [#allocation6], 2064  }
  0x59   :  { %2898 = vsyncadd [#allocation6], 4294965232 }
  0x5a   :  { %2899 = dma.done.wait [#allocation9], 8192  }
  0x5b   :  { %2900 = vsyncadd [#allocation9], 4294959104  ;;  %v2912_v0 = vmov 0   ;;  %v2643_v1 = vld [vmem:[#allocation5 + $0x4] ss:$8 sps:$4 sm:$0xff]   ;;  %v3066_v20 = vld [vmem:[#allocation2 + $0x10] sm:$0xff] }
  0x5c   :  { %249 = vmatprep.mubr.bf16.mxu0 %v2912_v0  ;;  %v2645_v2 = vld [vmem:[#allocation5] ss:$8 sps:$4 sm:$0xff]   ;;  %217 = vmatprep.subr.bf16.mxu0 %v2643_v1  ;;  %v2646_v3 = vld [vmem:[#allocation5 + $0x14] ss:$8 sps:$4 sm:$0xff]   ;;  %v2648_v4 = vld [vmem:[#allocation5 + $0x10] ss:$8 sps:$4 sm:$0xff]  }
  0x5d   :  { %218 = vmatpush1.bf16.msra.mxu0 %v2645_v2  ;;  %v2649_v5 = vld [vmem:[#allocation5 + $0x24] ss:$8 sps:$4 sm:$0xff]   ;;  %v2651_v6 = vld [vmem:[#allocation5 + $0x20] ss:$8 sps:$4 sm:$0xff]   ;;  %v2652_v7 = vld [vmem:[#allocation5 + $0x34] ss:$8 sps:$4 sm:$0xff]  }
  0x5e   :  { %219 = vmatprep.subr.bf16.mxu0 %v2646_v3  ;;  %v2654_v8 = vld [vmem:[#allocation5 + $0x30] ss:$8 sps:$4 sm:$0xff]   ;;  %v2655_v9 = vld [vmem:[#allocation5 + $0x44] ss:$8 sps:$4 sm:$0xff]   ;;  %v2657_v10 = vld [vmem:[#allocation5 + $0x40] ss:$8 sps:$4 sm:$0xff]  }
  0x5f   :  { %v2658_v11 = vld [vmem:[#allocation5 + $0x54] ss:$8 sps:$4 sm:$0xff]   ;;  %v2660_v12 = vld [vmem:[#allocation5 + $0x50] ss:$8 sps:$4 sm:$0xff]   ;;  %v2661_v13 = vld [vmem:[#allocation5 + $0x64] ss:$8 sps:$4 sm:$0xff]  }
  0x60   :  { %v2663_v14 = vld [vmem:[#allocation5 + $0x60] ss:$8 sps:$4 sm:$0xff]   ;;  %v2664_v15 = vld [vmem:[#allocation5 + $0x74] ss:$8 sps:$4 sm:$0xff]   ;;  %v2666_v16 = vld [vmem:[#allocation5 + $0x70] ss:$8 sps:$4 sm:$0xff]  }
  0x61   :  { %220 = vmatpush1.bf16.msra.mxu0 %v2648_v4  ;;  %v3060_v17 = vld [vmem:[#allocation2] sm:$0xff]  ;;  %v3062_v18 = vld [vmem:[#allocation2 + $0x8] sm:$0xff]  ;;  %v3068_v21 = vld [vmem:[#allocation2 + $0x18] sm:$0xff]  ;;  %v2913_v29 = vmov 0.0   ;;  %vm2914_vm0 = vmmov 0   ;;  %vm344_vm1 = vcmask 1043456  }
  0x62   :  { %221 = vmatprep.subr.bf16.mxu0 %v2649_v5  ;;  %v117_v19 = vpack.c.bf16 %v3062_v18, %v3060_v17  ;;  %v118_v22 = vpack.c.bf16 %v3068_v21, %v3066_v20  ;;  %v3072_v23 = vld [vmem:[#allocation2 + $0x20] sm:$0xff]  ;;  %v3074_v24 = vld [vmem:[#allocation2 + $0x28] sm:$0xff]  ;;  %v3078_v26 = vld [vmem:[#allocation2 + $0x30] sm:$0xff]  ;;  %2534 = vmatprep.subr.bf16.mxu1 %v2913_v29  ;;  %vm340_vm2 = vcmask 64512  }
  0x63   :  { %v119_v25 = vpack.c.bf16 %v3074_v24, %v3072_v23  ;;  %v3080_v27 = vld [vmem:[#allocation2 + $0x38] sm:$0xff]  ;;  %2536 = vmatprep.mubr.msk.bf16.mxu1 %vm2914_vm0, %v2913_v29  ;;  %v3097_v39 = vld [vmem:[%s3529_s1] sm:$0xf] }
  0x64   :  { %v120_v28 = vpack.c.bf16 %v3080_v27, %v3078_v26  ;;  %v3103_v40 = vld [vmem:[%s3530_s2] sm:$0xf] }
  0x65   :  { %222 = vmatpush1.bf16.msra.mxu0 %v2651_v6 }
  0x66   :  { %223 = vmatprep.subr.bf16.mxu0 %v2652_v7 }
  0x69   :  { %224 = vmatpush1.bf16.msra.mxu0 %v2654_v8 }
  0x6a   :  { %225 = vmatprep.subr.bf16.mxu0 %v2655_v9 }
  0x6d   :  { %226 = vmatpush1.bf16.msra.mxu0 %v2657_v10 }
  0x6e   :  { %227 = vmatprep.subr.bf16.mxu0 %v2658_v11 }
  0x71   :  { %228 = vmatpush1.bf16.msra.mxu0 %v2660_v12 }
  0x72   :  { %229 = vmatprep.subr.bf16.mxu0 %v2661_v13 }
  0x75   :  { %230 = vmatpush1.bf16.msra.mxu0 %v2663_v14 }
  0x76   :  { %231 = vmatprep.subr.bf16.mxu0 %v2664_v15 }
  0x79   :  { %232 = vmatpush1.bf16.msra.mxu0 %v2666_v16 }
  0x7a   :  { %2582 = vmatprep.subr.bf16.mxu0 %v2913_v29 }
  0x7c   :  { %250 = vmatmul.mubr.bf16.vlgmr.msra.gmra.mrb[0].mxu0 %v117_v19 }
  0x7d   :  { %259 = vmatprep.mubr.bf16.mxu0 %v2912_v0 }
  0x84   :  { %260 = vmatmul.mubr.bf16.gmra.mrb[4].mxu0 %v118_v22 }
  0x85   :  { %269 = vmatprep.mubr.bf16.mxu0 %v2912_v0 }
  0x8c   :  { %270 = vmatmul.mubr.bf16.gmra.mrb[8].mxu0 %v119_v25 }
  0x8d   :  { %279 = vmatprep.mubr.bf16.mxu0 %v2912_v0 }
  0x94   :  { %280 = vmatmul.mubr.bf16.gmra.mrb[12].mxu0 %v120_v28 }
  0x95   :  { %2584 = vmatprep.mubr.msk.bf16.mxu0 %vm2914_vm0, %v2913_v29 }
 0x14f   :  { %v251_v30 = vpop.f32.mrb[0].mxu0 }
 0x150   :  { %v2358_v31 = vpack.c.bf16 %v251_v30, %v251_v30  ;;  %v253_v32 = vpop.f32.mrb[1].mxu0 }
 0x151   :  { %v2366_v33 = vpack.c.bf16 %v253_v32, %v253_v32  ;;  %v255_v34 = vpop.f32.mrb[2].mxu0 }
 0x152   :  { %v2359_v35 = vpack.c.bf16 %v255_v34, %v255_v34  ;;  %v3090_v36 = vpop.f32.mrb[3].mxu0  ;;  %v346_v37 = vsel %vm344_vm1, %v2358_v31, 0 }
 0x153   :  { %v693_v38 = vsel %vm344_vm1, %v2366_v33, 0  ;;  %2535 = vmatpush3.bf16.msra.mxu1 %v346_v37  ;;  %v2367_v14 = vpack.c.bf16 %v3090_v36, %v3090_v36 }
 0x154   :  { %2583 = vmatpush3.bf16.msra.mxu0 %v693_v38  ;;  %2540 = vmatprep.subr.bf16.mxu1 %v2913_v29  ;;  %v389_v41 = vsel %vm344_vm1, %v2359_v35, 0 }
 0x155   :  { %2594 = vmatprep.subr.bf16.mxu0 %v2913_v29  ;;  %v736_v15 = vsel %vm344_vm1, %v2367_v14, 0  ;;  %v2677_v14 = vld [vmem:[#allocation8 + $0x10] sm:$0xff]  }
 0x156   :  { %2537 = vmatmul.mubr.msk.bf16.vlgmr.msra.gmra.mrb[0].mxu1 %vm340_vm2, %v3097_v39 }
 0x157   :  { %2541 = vmatpush3.bf16.msra.mxu1 %v389_v41  ;;  %2585 = vmatmul.mubr.msk.bf16.vlgmr.msra.gmra.mrb[16].mxu0 %vm340_vm2, %v3103_v40  ;;  %v261_v42 = vpop.f32.mrb[4].mxu0 }
 0x158   :  { %v2360_v43 = vpack.c.bf16 %v261_v42, %v261_v42  ;;  %v263_v44 = vpop.f32.mrb[5].mxu0  ;;  %2542 = vmatprep.mubr.msk.bf16.mxu1 %vm2914_vm0, %v2913_v29  ;;  %2546 = vmatprep.subr.bf16.mxu1 %v2913_v29 }
 0x159   :  { %v2368_v45 = vpack.c.bf16 %v263_v44, %v263_v44  ;;  %v265_v46 = vpop.f32.mrb[6].mxu0  ;;  %2596 = vmatprep.mubr.msk.bf16.mxu0 %vm2914_vm0, %v2913_v29 }
 0x15a   :  { %v267_v47 = vpop.f32.mrb[7].mxu0  ;;  %v432_v50 = vsel %vm344_vm1, %v2360_v43, 0  ;;  %v2361_v56 = vpack.c.bf16 %v265_v46, %v265_v46 }
 0x15b   :  { %v779_v48 = vsel %vm344_vm1, %v2368_v45, 0  ;;  %v2369_v49 = vpack.c.bf16 %v267_v47, %v267_v47 }
 0x15c   :  { %2595 = vmatpush3.bf16.msra.mxu0 %v779_v48  ;;  %v475_v61 = vsel %vm344_vm1, %v2361_v56, 0 }
 0x15d   :  { %v3119_v51 = vsel %vm344_vm1, %v2369_v49, 0  ;;  %2606 = vmatprep.subr.bf16.mxu0 %v2913_v29 }
 0x15e   :  { %2543 = vmatmul.mubr.msk.bf16.vlgmr.msra.gmra.mrb[4].mxu1 %vm340_vm2, %v3097_v39 }
 0x15f   :  { %2547 = vmatpush3.bf16.msra.mxu1 %v432_v50  ;;  %2548 = vmatprep.mubr.msk.bf16.mxu1 %vm2914_vm0, %v2913_v29  ;;  %v271_v52 = vpop.f32.mrb[8].mxu0 }
 0x160   :  { %2552 = vmatprep.subr.bf16.mxu1 %v2913_v29  ;;  %2597 = vmatmul.mubr.msk.bf16.vlgmr.msra.gmra.mrb[20].mxu0 %vm340_vm2, %v3103_v40  ;;  %v273_v53 = vpop.f32.mrb[9].mxu0  ;;  %v2362_v63 = vpack.c.bf16 %v271_v52, %v271_v52 }
 0x161   :  { %v2370_v54 = vpack.c.bf16 %v273_v53, %v273_v53  ;;  %v275_v55 = vpop.f32.mrb[10].mxu0  ;;  %2608 = vmatprep.mubr.msk.bf16.mxu0 %vm2914_vm0, %v2913_v29 }
 0x162   :  { %v277_v57 = vpop.f32.mrb[11].mxu0  ;;  %v518_v6 = vsel %vm344_vm1, %v2362_v63, 0  ;;  %v2363_v8 = vpack.c.bf16 %v275_v55, %v275_v55  ;;  %v2671_v63 = vld [vmem:[#allocation8 + $0x48] sm:$0xff]  }
 0x163   :  { %v865_v58 = vsel %vm344_vm1, %v2370_v54, 0  ;;  %v2371_v59 = vpack.c.bf16 %v277_v57, %v277_v57 }
 0x164   :  { %2607 = vmatpush3.bf16.msra.mxu0 %v865_v58  ;;  %v561_v9 = vsel %vm344_vm1, %v2363_v8, 0  ;;  %v2675_v8 = vld [vmem:[#allocation8 + $0x50] sm:$0xff]  }
 0x165   :  { %v908_v60 = vsel %vm344_vm1, %v2371_v59, 0  ;;  %2618 = vmatprep.subr.bf16.mxu0 %v2913_v29  ;;  %v2667_v59 = vld [vmem:[#allocation8 + $0x40] sm:$0xff]  }
 0x166   :  { %2549 = vmatmul.mubr.msk.bf16.vlgmr.msra.gmra.mrb[8].mxu1 %vm340_vm2, %v3097_v39 }
 0x167   :  { %2553 = vmatpush3.bf16.msra.mxu1 %v475_v61  ;;  %2554 = vmatprep.mubr.msk.bf16.mxu1 %vm2914_vm0, %v2913_v29  ;;  %v281_v62 = vpop.f32.mrb[12].mxu0  ;;  %v2669_v61 = vld [vmem:[#allocation8] sm:$0xff]  }
 0x168   :  { %2558 = vmatprep.subr.bf16.mxu1 %v2913_v29  ;;  %2609 = vmatmul.mubr.msk.bf16.vlgmr.msra.gmra.mrb[24].mxu0 %vm340_vm2, %v3103_v40  ;;  %v283_v0 = vpop.f32.mrb[13].mxu0  ;;  %v2364_v10 = vpack.c.bf16 %v281_v62, %v281_v62  ;;  %v2670_v62 = vld [vmem:[#allocation8 + $0x80] sm:$0xff]  }
 0x169   :  { %v2372_v1 = vpack.c.bf16 %v283_v0, %v283_v0  ;;  %v285_v2 = vpop.f32.mrb[14].mxu0  ;;  %2620 = vmatprep.mubr.msk.bf16.mxu0 %vm2914_vm0, %v2913_v29  ;;  %v2672_v0 = vld [vmem:[#allocation8 + $0xc8] sm:$0xff]  }
 0x16a   :  { %v287_v3 = vpop.f32.mrb[15].mxu0  ;;  %v604_v11 = vsel %vm344_vm1, %v2364_v10, 0  ;;  %v2365_v12 = vpack.c.bf16 %v285_v2, %v285_v2 }
 0x16b   :  { %v951_v4 = vsel %vm344_vm1, %v2372_v1, 0  ;;  %v2373_v5 = vpack.c.bf16 %v287_v3, %v287_v3 }
 0x16c   :  { %2619 = vmatpush3.bf16.msra.mxu0 %v951_v4  ;;  %v647_v13 = vsel %vm344_vm1, %v2365_v12, 0 }
 0x16d   :  { %v994_v7 = vsel %vm344_vm1, %v2373_v5, 0  ;;  %2406 = vmatprep.subr.bf16.mxu0 %v2667_v59 }
 0x16e   :  { %2555 = vmatmul.mubr.msk.bf16.vlgmr.msra.gmra.mrb[12].mxu1 %vm340_vm2, %v3097_v39 }
 0x16f   :  { %2559 = vmatpush3.bf16.msra.mxu1 %v518_v6  ;;  %2560 = vmatprep.mubr.msk.bf16.mxu1 %vm2914_vm0, %v2913_v29  ;;  %v2673_v6 = vld [vmem:[#allocation8 + $0x8] sm:$0xff]  }
 0x170   :  { %2564 = vmatprep.subr.bf16.mxu1 %v2913_v29  ;;  %2621 = vmatmul.mubr.msk.bf16.vlgmr.msra.gmra.mrb[28].mxu0 %vm340_vm2, %v3103_v40 }
 0x175   :  { %2407 = vmatpush3.bf16.xpose.msra.mxu0 %v2669_v61 }
 0x176   :  { %2561 = vmatmul.mubr.msk.bf16.vlgmr.msra.gmra.mrb[16].mxu1 %vm340_vm2, %v3097_v39  ;;  %2408 = vmatprep.subr.bf16.mxu0 %v2671_v63 }
 0x177   :  { %2565 = vmatpush3.bf16.msra.mxu1 %v561_v9  ;;  %2566 = vmatprep.mubr.msk.bf16.mxu1 %vm2914_vm0, %v2913_v29  ;;  %v2676_v9 = vld [vmem:[#allocation8 + $0xd0] sm:$0xff]  }
 0x178   :  { %2570 = vmatprep.subr.bf16.mxu1 %v2913_v29 }
 0x17d   :  { %2409 = vmatpush3.bf16.xpose.msra.mxu0 %v2673_v6 }
 0x17e   :  { %2567 = vmatmul.mubr.msk.bf16.vlgmr.msra.gmra.mrb[20].mxu1 %vm340_vm2, %v3097_v39  ;;  %2410 = vmatprep.subr.bf16.mxu0 %v2675_v8 }
 0x17f   :  { %2571 = vmatpush3.bf16.msra.mxu1 %v604_v11  ;;  %2572 = vmatprep.mubr.msk.bf16.mxu1 %vm2914_vm0, %v2913_v29 }
 0x180   :  { %2576 = vmatprep.subr.bf16.mxu1 %v2913_v29 }
 0x185   :  { %2411 = vmatpush3.bf16.xpose.msra.mxu0 %v2677_v14  ;;  %v2697_v14 = vld [vmem:[#allocation8 + $0x38] sm:$0xff]  }
 0x186   :  { %2573 = vmatmul.mubr.msk.bf16.vlgmr.msra.gmra.mrb[24].mxu1 %vm340_vm2, %v3097_v39 }
 0x187   :  { %2577 = vmatpush3.bf16.msra.mxu1 %v647_v13  ;;  %2578 = vmatprep.mubr.msk.bf16.mxu1 %vm2914_vm0, %v2913_v29 }
 0x188   :  { %2588 = vmatprep.subr.bf16.mxu1 %v2913_v29 }
 0x18e   :  { %2579 = vmatmul.mubr.msk.bf16.vlgmr.msra.gmra.mrb[28].mxu1 %vm340_vm2, %v3097_v39 }
 0x18f   :  { %2589 = vmatpush3.bf16.msra.mxu1 %v736_v15  ;;  %2590 = vmatprep.mubr.msk.bf16.mxu1 %vm2914_vm0, %v2913_v29  ;;  %v2678_v15 = vld [vmem:[#allocation8 + $0x90] sm:$0xff]  }
 0x190   :  { %2600 = vmatprep.subr.bf16.mxu1 %v2913_v29 }
 0x196   :  { %2591 = vmatmul.mubr.msk.bf16.vlgmr.msra.gmra.mrb[32].mxu1 %vm340_vm2, %v3103_v40 }
 0x197   :  { %2601 = vmatpush3.bf16.msra.mxu1 %v3119_v51  ;;  %2602 = vmatprep.mubr.msk.bf16.mxu1 %vm2914_vm0, %v2913_v29 }
 0x198   :  { %2612 = vmatprep.subr.bf16.mxu1 %v2913_v29 }
 0x19e   :  { %2603 = vmatmul.mubr.msk.bf16.vlgmr.msra.gmra.mrb[36].mxu1 %vm340_vm2, %v3103_v40 }
 0x19f   :  { %2613 = vmatpush3.bf16.msra.mxu1 %v908_v60  ;;  %2614 = vmatprep.mubr.msk.bf16.mxu1 %vm2914_vm0, %v2913_v29  ;;  %v2668_v60 = vld [vmem:[#allocation8 + $0xc0] sm:$0xff]  }
 0x1a0   :  { %2624 = vmatprep.subr.bf16.mxu1 %v2913_v29 }
 0x1a6   :  { %2615 = vmatmul.mubr.msk.bf16.vlgmr.msra.gmra.mrb[40].mxu1 %vm340_vm2, %v3103_v40 }
 0x1a7   :  { %2625 = vmatpush3.bf16.msra.mxu1 %v994_v7  ;;  %2626 = vmatprep.mubr.msk.bf16.mxu1 %vm2914_vm0, %v2913_v29  ;;  %v2674_v7 = vld [vmem:[#allocation8 + $0x88] sm:$0xff]  }
 0x1a8   :  { %2430 = vmatprep.subr.bf16.mxu1 %v2668_v60 }
 0x1ae   :  { %2627 = vmatmul.mubr.msk.bf16.vlgmr.msra.gmra.mrb[44].mxu1 %vm340_vm2, %v3103_v40 }
 0x1b0   :  { %2431 = vmatpush3.bf16.xpose.msra.mxu1 %v2670_v62 }
 0x1b1   :  { %2432 = vmatprep.subr.bf16.mxu1 %v2672_v0  ;;  %v2687_v0 = vld [vmem:[#allocation8 + $0x68] sm:$0xff]  }
 0x1b8   :  { %2433 = vmatpush3.bf16.xpose.msra.mxu1 %v2674_v7 }
 0x1b9   :  { %2434 = vmatprep.subr.bf16.mxu1 %v2676_v9  ;;  %v2691_v9 = vld [vmem:[#allocation8 + $0x70] sm:$0xff]  }
 0x1c0   :  { %2435 = vmatpush3.bf16.xpose.msra.mxu1 %v2678_v15  ;;  %v2698_v15 = vld [vmem:[#allocation8 + $0xb8] sm:$0xff]  }
 0x229   :  { %v382_v16 = vpop.f32.mrb[0].mxu1 }
 0x22a   :  { %v2538_v19 = vpop.f32.mrb[1].mxu1  ;;  %v729_v22 = vpop.f32.mrb[16].mxu0 }
 0x22b   :  { %v1036_v25 = vsub.f32 %v382_v16, %v729_v22  ;;  %v385_v28 = vpop.f32.mrb[2].mxu1  ;;  %v2586_v30 = vpop.f32.mrb[17].mxu0  ;;  %v2679_v16 = vld [vmem:[#allocation8 + $0x58] sm:$0xff]  }
 0x22c   :  { %v2539_v31 = vpop.f32.mrb[3].mxu1  ;;  %v732_v32 = vpop.f32.mrb[18].mxu0  ;;  %v2680_v19 = vld [vmem:[#allocation8 + $0xd8] sm:$0xff]   ;;  %2412 = vmatprep.subr.bf16.mxu0 %v2679_v16  ;;  %v2699_v16 = vld [vmem:[#allocation10 + $0x40] sm:$0xff]  }
 0x22d   :  { %v3198_v33 = vadd.f32 %v1036_v25, %v3060_v17  ;;  %v2587_v34 = vpop.f32.mrb[19].mxu0  ;;  %2436 = vmatprep.subr.bf16.mxu1 %v2680_v19  ;;  %v2681_v32 = vld [vmem:[#allocation8 + $0x18] sm:$0xff]   ;;  %v2700_v19 = vld [vmem:[#allocation10 + $0xc0] sm:$0xff]  }
 0x22e   :  { %v2682_v34 = vld [vmem:[#allocation8 + $0x98] sm:$0xff]   ;;  %2413 = vmatpush3.bf16.xpose.msra.mxu0 %v2681_v32 }
 0x22f   :  { %1054 = vadd.xlane.f32.xlu0 %v3198_v33  ;;  %v1079_v29 = vmul.f32 %v3198_v33, %v3198_v33  ;;  %2437 = vmatpush3.bf16.xpose.msra.mxu1 %v2682_v34 }
 0x231   :  { %v3203_v35 = vpop.f32.mrb[4].mxu1  ;;  %1087 = vadd.xlane.f32.xlu1 %v1079_v29  ;;  %v2683_v29 = vld [vmem:[#allocation8 + $0x60] sm:$0xff]  }
 0x232   :  { %v2544_v36 = vpop.f32.mrb[5].mxu1  ;;  %2414 = vmatprep.subr.bf16.mxu0 %v2683_v29 }
 0x233   :  { %v428_v37 = vpop.f32.mrb[6].mxu1  ;;  %v3205_v38 = vpop.f32.mrb[20].mxu0  ;;  %v2684_v36 = vld [vmem:[#allocation8 + $0xe0] sm:$0xff]  }
 0x234   :  { %v2545_v39 = vpop.f32.mrb[7].mxu1  ;;  %v2598_v40 = vpop.f32.mrb[21].mxu0  ;;  %2438 = vmatprep.subr.bf16.mxu1 %v2684_v36 }
 0x235   :  { %v818_v41 = vpop.f32.mrb[22].mxu0 }
 0x236   :  { %v2599_v42 = vpop.f32.mrb[23].mxu0 }
 0x237   :  { %v2685_v42 = vld [vmem:[#allocation8 + $0x20] sm:$0xff]  }
 0x238   :  { %2415 = vmatpush3.bf16.xpose.msra.mxu0 %v2685_v42 }
 0x239   :  { %v3207_v43 = vpop.f32.mrb[8].mxu1  ;;  %2416 = vmatprep.subr.bf16.mxu0 %v2687_v0 }
 0x23a   :  { %v2550_v17 = vpop.f32.mrb[9].mxu1  ;;  %v1038_v44 = vsub.f32 %v3207_v43, %v3205_v38 }
 0x23b   :  { %v471_v45 = vpop.f32.mrb[10].mxu1  ;;  %v3211_v46 = vpop.f32.mrb[24].mxu0 }
 0x23c   :  { %v2551_v47 = vpop.f32.mrb[11].mxu1  ;;  %v2610_v48 = vpop.f32.mrb[25].mxu0 }
 0x23d   :  { %v904_v49 = vpop.f32.mrb[26].mxu0 }
 0x23e   :  { %v2611_v50 = vpop.f32.mrb[27].mxu0 }
 0x241   :  { %v3213_v51 = vpop.f32.mrb[12].mxu1 }
 0x242   :  { %v2556_v52 = vpop.f32.mrb[13].mxu1 }
 0x243   :  { %v514_v53 = vpop.f32.mrb[14].mxu1  ;;  %v3215_v54 = vpop.f32.mrb[28].mxu0 }
 0x244   :  { %v2557_v55 = vpop.f32.mrb[15].mxu1  ;;  %v2622_v56 = vpop.f32.mrb[29].mxu0  ;;  %v3235_v53 = vadd.f32 %v1038_v44, %v3066_v20 }
 0x245   :  { %v990_v57 = vpop.f32.mrb[30].mxu0 }
 0x246   :  { %v2623_v58 = vpop.f32.mrb[31].mxu0 }
 0x247   :  { %v1081_v58 = vmul.f32 %v3235_v53, %v3235_v53 }
 0x249   :  { %v3217_v1 = vpop.f32.mrb[16].mxu1 }
 0x24a   :  { %v2562_v2 = vpop.f32.mrb[17].mxu1  ;;  %v1040_v3 = vsub.f32 %v3217_v1, %v3211_v46  ;;  %v2688_v1 = vld [vmem:[#allocation8 + $0xe8] sm:$0xff]  }
 0x24b   :  { %v557_v4 = vpop.f32.mrb[18].mxu1 }
 0x24c   :  { %v2563_v5 = vpop.f32.mrb[19].mxu1  ;;  %v3249_v20 = vadd.f32 %v1040_v3, %v3072_v23  ;;  %v2689_v3 = vld [vmem:[#allocation8 + $0x28] sm:$0xff]  }
 0x24d   :  { %v2690_v4 = vld [vmem:[#allocation8 + $0xa8] sm:$0xff]   ;;  %2417 = vmatpush3.bf16.xpose.msra.mxu0 %v2689_v3 }
 0x24e   :  { %v1083_v23 = vmul.f32 %v3249_v20, %v3249_v20  ;;  %2418 = vmatprep.subr.bf16.mxu0 %v2691_v9 }
 0x251   :  { %v3221_v10 = vpop.f32.mrb[20].mxu1 }
 0x252   :  { %v2568_v11 = vpop.f32.mrb[21].mxu1 }
 0x253   :  { %v600_v12 = vpop.f32.mrb[22].mxu1  ;;  %v2693_v11 = vld [vmem:[#allocation8 + $0x30] sm:$0xff]  }
 0x254   :  { %v2569_v13 = vpop.f32.mrb[23].mxu1  ;;  %v2694_v12 = vld [vmem:[#allocation8 + $0xb0] sm:$0xff]  }
 0x255   :  { %2419 = vmatpush3.bf16.xpose.msra.mxu0 %v2693_v11  ;;  %v2696_v13 = vld [vmem:[#allocation8 + $0xf8] sm:$0xff]  }
 0x259   :  { %v640_v22 = vpop.f32.mrb[24].mxu1 }
 0x25a   :  { %v2574_v25 = vpop.f32.mrb[25].mxu1  ;;  %v1042_v28 = vsub.f32 %v640_v22, %v3215_v54 }
 0x25b   :  { %v643_v30 = vpop.f32.mrb[26].mxu1 }
 0x25c   :  { %v2575_v31 = vpop.f32.mrb[27].mxu1  ;;  %v3262_v46 = vadd.f32 %v1042_v28, %v3078_v26 }
 0x25e   :  { %v1085_v7 = vmul.f32 %v3262_v46, %v3262_v46 }
 0x261   :  { %v683_v37 = vpop.f32.mrb[28].mxu1 }
 0x262   :  { %v2580_v39 = vpop.f32.mrb[29].mxu1 }
 0x263   :  { %v686_v40 = vpop.f32.mrb[30].mxu1 }
 0x264   :  { %v2581_v41 = vpop.f32.mrb[31].mxu1 }
 0x269   :  { %v772_v17 = vpop.f32.mrb[32].mxu1 }
 0x26a   :  { %v1037_v45 = vsub.f32 %v3203_v35, %v772_v17  ;;  %v2592_v47 = vpop.f32.mrb[33].mxu1 }
 0x26b   :  { %v775_v48 = vpop.f32.mrb[34].mxu1 }
 0x26c   :  { %v3226_v49 = vadd.f32 %v1037_v45, %v3062_v18  ;;  %v2593_v50 = vpop.f32.mrb[35].mxu1 }
 0x26e   :  { %1056 = vadd.xlane.f32.xlu0 %v3226_v49  ;;  %v1080_v52 = vmul.f32 %v3226_v49, %v3226_v49 }
 0x270   :  { %1089 = vadd.xlane.f32.xlu1 %v1080_v52 }
 0x271   :  { %v858_v35 = vpop.f32.mrb[36].mxu1 }
 0x272   :  { %v1039_v54 = vsub.f32 %v3213_v51, %v858_v35  ;;  %v2604_v55 = vpop.f32.mrb[37].mxu1  ;;  %1058 = vadd.xlane.f32.xlu0 %v3235_v53  ;;  %v2686_v51 = vld [vmem:[#allocation8 + $0xa0] sm:$0xff]  }
 0x273   :  { %v861_v18 = vpop.f32.mrb[38].mxu1  ;;  %2439 = vmatpush3.bf16.xpose.msra.mxu1 %v2686_v51 }
 0x274   :  { %v3240_v56 = vadd.f32 %v1039_v54, %v3068_v21  ;;  %v2605_v57 = vpop.f32.mrb[39].mxu1  ;;  %2440 = vmatprep.subr.bf16.mxu1 %v2688_v1 }
 0x276   :  { %1060 = vadd.xlane.f32.xlu1 %v3240_v56  ;;  %1091 = vadd.xlane.f32.xlu0 %v1081_v58  ;;  %v1082_v38 = vmul.f32 %v3240_v56, %v3240_v56 }
 0x279   :  { %v944_v43 = vpop.f32.mrb[40].mxu1 }
 0x27a   :  { %v1041_v21 = vsub.f32 %v3221_v10, %v944_v43  ;;  %v2616_v44 = vpop.f32.mrb[41].mxu1  ;;  %1093 = vadd.xlane.f32.xlu1 %v1082_v38  ;;  %1062 = vadd.xlane.f32.xlu0 %v3249_v20  ;;  %v2692_v10 = vld [vmem:[#allocation8 + $0xf0] sm:$0xff]  }
 0x27b   :  { %v947_v59 = vpop.f32.mrb[42].mxu1  ;;  %2441 = vmatpush3.bf16.xpose.msra.mxu1 %v2690_v4 }
 0x27c   :  { %v3256_v60 = vadd.f32 %v1041_v21, %v3074_v24  ;;  %v2617_v61 = vpop.f32.mrb[43].mxu1  ;;  %2442 = vmatprep.subr.bf16.mxu1 %v2692_v10 }
 0x27e   :  { %1064 = vadd.xlane.f32.xlu1 %v3256_v60  ;;  %1095 = vadd.xlane.f32.xlu0 %v1083_v23  ;;  %v1084_v62 = vmul.f32 %v3256_v60, %v3256_v60 }
 0x281   :  { %v1030_v63 = vpop.f32.mrb[44].mxu1 }
 0x282   :  { %v1043_v2 = vsub.f32 %v683_v37, %v1030_v63  ;;  %1097 = vadd.xlane.f32.xlu1 %v1084_v62  ;;  %1066 = vadd.xlane.f32.xlu0 %v3262_v46  ;;  %v2628_v24 = vpop.f32.mrb[45].mxu1 }
 0x283   :  { %v1033_v5 = vpop.f32.mrb[46].mxu1  ;;  %2443 = vmatpush3.bf16.xpose.msra.mxu1 %v2694_v12 }
 0x284   :  { %v3268_v6 = vadd.f32 %v1043_v2, %v3080_v27  ;;  %v2629_v26 = vpop.f32.mrb[47].mxu1  ;;  %v2695_v27 = vld [vmem:[#allocation8 + $0x78] sm:$0xff]   ;;  %2444 = vmatprep.subr.bf16.mxu1 %v2696_v13 }
 0x285   :  { %2420 = vmatprep.subr.bf16.mxu0 %v2695_v27  ;;  %v3289_v26 = vld [vmem:[%s3532_s4] ss:$0 sm:$0xff] }
 0x286   :  { %1099 = vadd.xlane.f32.xlu0 %v1085_v7  ;;  %1068 = vadd.xlane.f32.xlu1 %v3268_v6  ;;  %v1086_v8 = vmul.f32 %v3268_v6, %v3268_v6 }
 0x287   :  { %2421 = vmatpush3.bf16.xpose.msra.mxu0 %v2697_v14 }
 0x288   :  { %2454 = vmatprep.subr.bf16.mxu0 %v2699_v16 }
 0x28a   :  { %1101 = vadd.xlane.f32.xlu1 %v1086_v8 }
 0x28b   :  { %2445 = vmatpush3.bf16.xpose.msra.mxu1 %v2698_v15 }
 0x28c   :  { %2494 = vmatprep.subr.bf16.mxu1 %v2700_v19 }
 0x2bc   :  { %v1055_v22 = vpop.xlane.xlu0 %1054 }
 0x2bd   :  { %v1071_v25 = vmul.f32 0.0078125, %v1055_v22 }
 0x2be   :  { %v1088_v28 = vpop.xlane.xlu1 %1087 }
 0x2bf   :  { %v1111_v30 = vmul.f32 %v1071_v25, %v1071_v25  ;;  %v1103_v31 = vmul.f32 0.0078125, %v1088_v28  ;;  %v1135_v23 = vsub.f32 %v3198_v33, %v1071_v25 }
 0x2c1   :  { %v1119_v32 = vsub.f32 %v1103_v31, %v1111_v30 }
 0x2c3   :  { %v1127_v34 = vmax.f32 %v1119_v32, 0.0 }
 0x2c5   :  { %v1143_v36 = vadd.f32 1e-05, %v1127_v34 }
 0x2c7   :  { %2731 = vrsqrt.f32 %v1143_v36 }
 0x2d1   :  { %v2732_v51 = vpop.eup %2731 }
 0x2d2   :  { %v1159_v3 = vmul.f32 %v2732_v51, %v1135_v23  ;;  %v2706_v51 = vld [vmem:[#allocation10 + $0x88] sm:$0xff]  }
 0x2d4   :  { %v1173_v14 = vmul.f32 %v3289_v26, %v1159_v3 }
 0x2fb   :  { %v1057_v29 = vpop.xlane.xlu0 %1056 }
 0x2fc   :  { %v1072_v37 = vmul.f32 0.0078125, %v1057_v29 }
 0x2fd   :  { %v1090_v39 = vpop.xlane.xlu1 %1089 }
 0x2fe   :  { %v1112_v40 = vmul.f32 %v1072_v37, %v1072_v37  ;;  %v1104_v41 = vmul.f32 0.0078125, %v1090_v39  ;;  %v1136_v33 = vsub.f32 %v3226_v49, %v1072_v37  ;;  %v3300_v49 = vld [vmem:[%s3533_s5] ss:$0 sm:$0xff] }
 0x2ff   :  { %v1059_v42 = vpop.xlane.xlu0 %1058  ;;  %v3309_v29 = vadd.f32 %v3300_v49, %v1173_v14  ;;  %v2716_v14 = vld [vmem:[#allocation10 + $0xe0] sm:$0xff]  }
 0x300   :  { %v1120_v17 = vsub.f32 %v1104_v41, %v1112_v40  ;;  %v1073_v45 = vmul.f32 0.0078125, %v1059_v42 }
 0x302   :  { %v1128_v47 = vmax.f32 %v1120_v17, 0.0  ;;  %v1113_v35 = vmul.f32 %v1073_v45, %v1073_v45  ;;  %v1137_v34 = vsub.f32 %v3235_v53, %v1073_v45 }
 0x303   :  { %v1061_v48 = vpop.xlane.xlu1 %1060  ;;  %v1092_v50 = vpop.xlane.xlu0 %1091 }
 0x304   :  { %v1144_v52 = vadd.f32 1e-05, %v1128_v47  ;;  %v3275_v54 = vmul.f32 0.0078125, %v1061_v48  ;;  %v1105_v55 = vmul.f32 0.0078125, %v1092_v50  ;;  %v2701_v47 = vld [vmem:[#allocation10] sm:$0xff]  }
 0x305   :  { %v2702_v48 = vld [vmem:[#allocation10 + $0x80] sm:$0xff]  }
 0x306   :  { %2733 = vrsqrt.f32 %v1144_v52  ;;  %v1121_v18 = vsub.f32 %v1105_v55, %v1113_v35  ;;  %v1114_v38 = vmul.f32 %v3275_v54, %v3275_v54  ;;  %v2703_v52 = vld [vmem:[#allocation10 + $0x48] sm:$0xff]   ;;  %v1138_v55 = vsub.f32 %v3240_v56, %v3275_v54  ;;  %v2708_v56 = vld [vmem:[#allocation10 + $0xd0] sm:$0xff]  }
 0x307   :  { %v1094_v57 = vpop.xlane.xlu1 %1093  ;;  %v1063_v58 = vpop.xlane.xlu0 %1062  ;;  %v2704_v35 = vld [vmem:[#allocation10 + $0xc8] sm:$0xff]  }
 0x308   :  { %v1129_v43 = vmax.f32 %v1121_v18, 0.0  ;;  %v1106_v21 = vmul.f32 0.0078125, %v1094_v57  ;;  %v3279_v44 = vmul.f32 0.0078125, %v1063_v58 }
 0x30a   :  { %v1145_v59 = vadd.f32 1e-05, %v1129_v43  ;;  %v1122_v61 = vsub.f32 %v1106_v21, %v1114_v38  ;;  %v1115_v62 = vmul.f32 %v3279_v44, %v3279_v44  ;;  %v2705_v21 = vld [vmem:[#allocation10 + $0x8] sm:$0xff]   ;;  %v1139_v54 = vsub.f32 %v3249_v20, %v3279_v44  ;;  %v2709_v44 = vld [vmem:[#allocation10 + $0x10] sm:$0xff]  }
 0x30b   :  { %v1065_v63 = vpop.xlane.xlu1 %1064  ;;  %v1096_v0 = vpop.xlane.xlu0 %1095 }
 0x30c   :  { %2735 = vrsqrt.f32 %v1145_v59  ;;  %v1130_v1 = vmax.f32 %v1122_v61, 0.0  ;;  %v3284_v2 = vmul.f32 0.0078125, %v1065_v63  ;;  %v1107_v24 = vmul.f32 0.0078125, %v1096_v0  ;;  %v2707_v61 = vld [vmem:[#allocation10 + $0x50] sm:$0xff]  }
 0x30e   :  { %v1146_v4 = vadd.f32 1e-05, %v1130_v1  ;;  %v1123_v5 = vsub.f32 %v1107_v24, %v1115_v62  ;;  %v1116_v7 = vmul.f32 %v3284_v2, %v3284_v2  ;;  %v1140_v3 = vsub.f32 %v3256_v60, %v3284_v2  ;;  %v2713_v2 = vld [vmem:[#allocation10 + $0x18] sm:$0xff]  }
 0x30f   :  { %v1098_v8 = vpop.xlane.xlu1 %1097  ;;  %v1067_v9 = vpop.xlane.xlu0 %1066 }
 0x310   :  { %v2734_v10 = vpop.eup %2733  ;;  %2737 = vrsqrt.f32 %v1146_v4  ;;  %v1131_v11 = vmax.f32 %v1123_v5, 0.0  ;;  %v1108_v12 = vmul.f32 0.0078125, %v1098_v8  ;;  %v3294_v27 = vmul.f32 0.0078125, %v1067_v9  ;;  %v2710_v4 = vld [vmem:[#allocation10 + $0x90] sm:$0xff]  }
 0x311   :  { %v1160_v13 = vmul.f32 %v2734_v10, %v1136_v33  ;;  %v2711_v33 = vld [vmem:[#allocation10 + $0x58] sm:$0xff]  }
 0x312   :  { %v1147_v15 = vadd.f32 1e-05, %v1131_v11  ;;  %v1124_v16 = vsub.f32 %v1108_v12, %v1116_v7  ;;  %v1117_v19 = vmul.f32 %v3294_v27, %v3294_v27  ;;  %v2712_v7 = vld [vmem:[#allocation10 + $0xd8] sm:$0xff]   ;;  %v1141_v10 = vsub.f32 %v3262_v46, %v3294_v27 }
 0x313   :  { %v1100_v22 = vpop.xlane.xlu0 %1099  ;;  %v1069_v25 = vpop.xlane.xlu1 %1068  ;;  %v1174_v28 = vmul.f32 %v3289_v26, %v1160_v13  ;;  %v2714_v11 = vld [vmem:[#allocation10 + $0x98] sm:$0xff]   ;;  %v2715_v13 = vld [vmem:[#allocation10 + $0x60] sm:$0xff]  }
 0x314   :  { %2739 = vrsqrt.f32 %v1147_v15  ;;  %v1132_v30 = vmax.f32 %v1124_v16, 0.0  ;;  %v1109_v31 = vmul.f32 0.0078125, %v1100_v22  ;;  %v3305_v32 = vmul.f32 0.0078125, %v1069_v25  ;;  %v2717_v22 = vld [vmem:[#allocation10 + $0x20] sm:$0xff]  }
 0x315   :  { %v3312_v36 = vadd.f32 %v3300_v49, %v1174_v28  ;;  %v2718_v25 = vld [vmem:[#allocation10 + $0xa0] sm:$0xff]  }
 0x316   :  { %v2736_v37 = vpop.eup %2735  ;;  %v1148_v39 = vadd.f32 1e-05, %v1132_v30  ;;  %v1125_v40 = vsub.f32 %v1109_v31, %v1117_v19  ;;  %v1118_v53 = vmul.f32 %v3305_v32, %v3305_v32  ;;  %v1142_v46 = vsub.f32 %v3268_v6, %v3305_v32  ;;  %v2719_v30 = vld [vmem:[#allocation10 + $0x68] sm:$0xff]  }
 0x317   :  { %v1102_v41 = vpop.xlane.xlu1 %1101  ;;  %v1195_v42 = vpack.c.bf16 %v3312_v36, %v3309_v29  ;;  %v1161_v17 = vmul.f32 %v2736_v37, %v1137_v34  ;;  %v2720_v31 = vld [vmem:[#allocation10 + $0xe8] sm:$0xff]  }
 0x318   :  { %2741 = vrsqrt.f32 %v1148_v39  ;;  %v1133_v50 = vmax.f32 %v1125_v40, 0.0  ;;  %v1110_v45 = vmul.f32 0.0078125, %v1102_v41  ;;  %v2721_v41 = vld [vmem:[#allocation10 + $0x28] sm:$0xff]  }
 0x319   :  { %2422 = vmatprep.mubr.bf16.mxu0 %v1195_v42  ;;  %2446 = vmatprep.mubr.bf16.mxu1 %v1195_v42  ;;  %v1175_v43 = vmul.f32 %v3289_v26, %v1161_v17  ;;  %v2724_v17 = vld [vmem:[#allocation10 + $0xf0] sm:$0xff]  }
 0x31a   :  { %v2738_v18 = vpop.eup %2737  ;;  %v1149_v57 = vadd.f32 1e-05, %v1133_v50  ;;  %v1126_v58 = vsub.f32 %v1110_v45, %v1118_v53  ;;  %2423 = vmatmul.mubr.bf16.vlgmr.msra.gmra.mrb[32].mxu0 %v1195_v42  ;;  %2447 = vmatmul.mubr.bf16.vlgmr.msra.gmra.mrb[48].mxu1 %v1195_v42  ;;  %v2722_v42 = vld [vmem:[#allocation10 + $0xa8] sm:$0xff]   ;;  %v2728_v50 = vld [vmem:[#allocation10 + $0xf8] sm:$0xff]  }
 0x31b   :  { %v1162_v38 = vmul.f32 %v2738_v18, %v1138_v55  ;;  %2455 = vmatpush3.bf16.msra.mxu0 %v2701_v47  ;;  %2495 = vmatpush3.bf16.msra.mxu1 %v2702_v48  ;;  %v3325_v0 = vadd.f32 %v3300_v49, %v1175_v43  ;;  %v2725_v47 = vld [vmem:[#allocation10 + $0x30] sm:$0xff]   ;;  %v2729_v53 = vld [vmem:[#allocation10 + $0x38] sm:$0xff]  }
 0x31c   :  { %2743 = vrsqrt.f32 %v1149_v57  ;;  %v1134_v59 = vmax.f32 %v1126_v58, 0.0  ;;  %2456 = vmatprep.subr.bf16.mxu0 %v2703_v52  ;;  %2496 = vmatprep.subr.bf16.mxu1 %v2704_v35  ;;  %v2726_v48 = vld [vmem:[#allocation10 + $0xb0] sm:$0xff]   ;;  %v2730_v45 = vld [vmem:[#allocation10 + $0xb8] sm:$0xff]   ;;  %v1265_v52 = vlaneseq }
 0x31d   :  { %v1176_v23 = vmul.f32 %v3289_v26, %v1162_v38  ;;  %v1263_v57 = vld [vmem:[%s3537_s9] sm:$0xf] }
 0x31e   :  { %v2740_v62 = vpop.eup %2739  ;;  %v1150_v63 = vadd.f32 1e-05, %v1134_v59  ;;  %v1266_v35 = vshrl.u32 %v1265_v52, 7 }
 0x31f   :  { %v3328_v1 = vadd.f32 %v3300_v49, %v1176_v23  ;;  %v1163_v24 = vmul.f32 %v2740_v62, %v1139_v54  ;;  %2457 = vmatpush3.bf16.msra.mxu0 %v2705_v21  ;;  %2497 = vmatpush3.bf16.msra.mxu1 %v2706_v51 }
 0x320   :  { %2745 = vrsqrt.f32 %v1150_v63  ;;  %2458 = vmatprep.subr.bf16.mxu0 %v2707_v61  ;;  %2498 = vmatprep.subr.bf16.mxu1 %v2708_v56  ;;  %v1267_v55 = vsub.s32 0, %v1266_v35  ;;  %v1275_v18 = vsub.s32 2, %v1266_v35  ;;  %v1271_v58 = vsub.s32 1, %v1266_v35 }
 0x321   :  { %v1196_v20 = vpack.c.bf16 %v3328_v1, %v3325_v0  ;;  %v1177_v9 = vmul.f32 %v3289_v26, %v1163_v24  ;;  %v1279_v38 = vsub.s32 3, %v1266_v35 }
 0x322   :  { %v2742_v5 = vpop.eup %2741  ;;  %v3361_v43 = vrot.slane %v1263_v57, %v1267_v55  ;;  %v3363_v21 = vrot.slane %v1263_v57, %v1275_v18  ;;  %v3365_v51 = vrot.slane %v1263_v57, %v1271_v58 }
 0x323   :  { %2424 = vmatprep.mubr.bf16.mxu0 %v1196_v20  ;;  %2448 = vmatprep.mubr.bf16.mxu1 %v1196_v20  ;;  %v1164_v8 = vmul.f32 %v2742_v5, %v1140_v3  ;;  %v3339_v15 = vadd.f32 %v3300_v49, %v1177_v9  ;;  %v3367_v59 = vrot.slane %v1263_v57, %v1279_v38 }
 0x324   :  { %2425 = vmatmul.mubr.bf16.gmra.mrb[36].mxu0 %v1196_v20  ;;  %2449 = vmatmul.mubr.bf16.gmra.mrb[52].mxu1 %v1196_v20 }
 0x325   :  { %v1178_v60 = vmul.f32 %v3289_v26, %v1164_v8  ;;  %2459 = vmatpush3.bf16.msra.mxu0 %v2709_v44  ;;  %2499 = vmatpush3.bf16.msra.mxu1 %v2710_v4 }
 0x326   :  { %v2744_v12 = vpop.eup %2743  ;;  %2460 = vmatprep.subr.bf16.mxu0 %v2711_v33  ;;  %2500 = vmatprep.subr.bf16.mxu1 %v2712_v7 }
 0x327   :  { %v3342_v16 = vadd.f32 %v3300_v49, %v1178_v60  ;;  %v1165_v19 = vmul.f32 %v2744_v12, %v1141_v10 }
 0x329   :  { %v1197_v27 = vpack.c.bf16 %v3342_v16, %v3339_v15  ;;  %2461 = vmatpush3.bf16.msra.mxu0 %v2713_v2  ;;  %2501 = vmatpush3.bf16.msra.mxu1 %v2714_v11  ;;  %v1179_v37 = vmul.f32 %v3289_v26, %v1165_v19 }
 0x32a   :  { %v2746_v28 = vpop.eup %2745  ;;  %2462 = vmatprep.subr.bf16.mxu0 %v2715_v13  ;;  %2502 = vmatprep.subr.bf16.mxu1 %v2716_v14 }
 0x32b   :  { %2426 = vmatprep.mubr.bf16.mxu0 %v1197_v27  ;;  %2450 = vmatprep.mubr.bf16.mxu1 %v1197_v27  ;;  %v1166_v34 = vmul.f32 %v2746_v28, %v1142_v46  ;;  %v3351_v32 = vadd.f32 %v3300_v49, %v1179_v37 }
 0x32c   :  { %2427 = vmatmul.mubr.bf16.gmra.mrb[40].mxu0 %v1197_v27  ;;  %2451 = vmatmul.mubr.bf16.gmra.mrb[56].mxu1 %v1197_v27 }
 0x32d   :  { %v1180_v6 = vmul.f32 %v3289_v26, %v1166_v34  ;;  %2463 = vmatpush3.bf16.msra.mxu0 %v2717_v22  ;;  %2503 = vmatpush3.bf16.msra.mxu1 %v2718_v25  ;;  %v2723_v26 = vld [vmem:[#allocation10 + $0x70] sm:$0xff]  }
 0x32e   :  { %2464 = vmatprep.subr.bf16.mxu0 %v2719_v30  ;;  %2504 = vmatprep.subr.bf16.mxu1 %v2720_v31 }
 0x32f   :  { %v3354_v39 = vadd.f32 %v3300_v49, %v1180_v6  ;;  %v2727_v49 = vld [vmem:[#allocation10 + $0x78] sm:$0xff]  }
 0x331   :  { %v1198_v40 = vpack.c.bf16 %v3354_v39, %v3351_v32  ;;  %2465 = vmatpush3.bf16.msra.mxu0 %v2721_v41  ;;  %2505 = vmatpush3.bf16.msra.mxu1 %v2722_v42 }
 0x332   :  { %2466 = vmatprep.subr.bf16.mxu0 %v2723_v26  ;;  %2506 = vmatprep.subr.bf16.mxu1 %v2724_v17 }
 0x333   :  { %2428 = vmatprep.mubr.bf16.mxu0 %v1198_v40  ;;  %2452 = vmatprep.mubr.bf16.mxu1 %v1198_v40 }
 0x334   :  { %2429 = vmatmul.mubr.bf16.gmra.mrb[44].mxu0 %v1198_v40  ;;  %2453 = vmatmul.mubr.bf16.gmra.mrb[60].mxu1 %v1198_v40 }
 0x335   :  { %2467 = vmatpush3.bf16.msra.mxu0 %v2725_v47  ;;  %2507 = vmatpush3.bf16.msra.mxu1 %v2726_v48 }
 0x336   :  { %2468 = vmatprep.subr.bf16.mxu0 %v2727_v49  ;;  %2508 = vmatprep.subr.bf16.mxu1 %v2728_v50 }
 0x339   :  { %2469 = vmatpush3.bf16.msra.mxu0 %v2729_v53  ;;  %2509 = vmatpush3.bf16.msra.mxu1 %v2730_v45 }
 0x3ed   :  { %v1511_v61 = vpop.f32.mrb[32].mxu0  ;;  %v1584_v56 = vpop.f32.mrb[48].mxu1 }
 0x3ee   :  { %v1512_v54 = vadd.f32 %v1511_v61, %v3361_v43  ;;  %v1585_v23 = vadd.f32 %v1584_v56, %v3363_v21  ;;  %v1513_v62 = vpop.f32.mrb[33].mxu0  ;;  %v1586_v63 = vpop.f32.mrb[49].mxu1 }
 0x3ef   :  { %v1514_v24 = vadd.f32 %v1513_v62, %v3365_v51  ;;  %v1587_v3 = vadd.f32 %v1586_v63, %v3367_v59  ;;  %v1515_v20 = vpop.f32.mrb[34].mxu0  ;;  %v1588_v44 = vpop.f32.mrb[50].mxu1 }
 0x3f0   :  { %v1516_v4 = vadd.f32 %v1515_v20, %v3361_v43  ;;  %v1589_v5 = vadd.f32 %v1588_v44, %v3363_v21  ;;  %v1517_v33 = vpop.f32.mrb[35].mxu0  ;;  %v1590_v7 = vpop.f32.mrb[51].mxu1  ;;  %v1623_v10 = vmax.f32 %v1512_v54, 0.0  ;;  %v1625_v60 = vmax.f32 %v1585_v23, 0.0 }
 0x3f1   :  { %v1518_v8 = vadd.f32 %v1517_v33, %v3365_v51  ;;  %v1591_v9 = vadd.f32 %v1590_v7, %v3367_v59  ;;  %v1624_v12 = vmax.f32 %v1514_v24, 0.0  ;;  %v1626_v13 = vmax.f32 %v1587_v3, 0.0 }
 0x3f2   :  { %v1627_v2 = vmax.f32 %v1516_v4, 0.0  ;;  %v1629_v11 = vmax.f32 %v1589_v5, 0.0 }
 0x3f3   :  { %v1628_v14 = vmax.f32 %v1518_v8, 0.0  ;;  %v1630_v19 = vmax.f32 %v1591_v9, 0.0 }
 0x3f4   :  { %v1655_v46 = vpack.c.bf16 %v1627_v2, %v1623_v10  ;;  %v1657_v27 = vpack.c.bf16 %v1629_v11, %v1625_v60 }
 0x3f5   :  { %v1656_v22 = vpack.c.bf16 %v1628_v14, %v1624_v12  ;;  %v1658_v25 = vpack.c.bf16 %v1630_v19, %v1626_v13 }
 0x3f7   :  { %v1521_v28 = vpop.f32.mrb[36].mxu0  ;;  %v1594_v30 = vpop.f32.mrb[52].mxu1  ;;  %1966 = vmatprep.mubr.bf16.mxu0 %v1656_v22  ;;  %2031 = vmatprep.mubr.bf16.mxu1 %v1658_v25 }
 0x3f8   :  { %v1522_v31 = vadd.f32 %v1521_v28, %v3361_v43  ;;  %v1595_v34 = vadd.f32 %v1594_v30, %v3363_v21  ;;  %v1523_v37 = vpop.f32.mrb[37].mxu0  ;;  %v1596_v6 = vpop.f32.mrb[53].mxu1  ;;  %1967 = vmatmul.mubr.bf16.vlgmr.msra.gmra.mrb[48].mxu0 %v1655_v46  ;;  %2032 = vmatmul.mubr.bf16.vlgmr.msra.gmra.mrb[64].mxu1 %v1657_v27 }
 0x3f9   :  { %v1524_v40 = vadd.f32 %v1523_v37, %v3365_v51  ;;  %v1597_v41 = vadd.f32 %v1596_v6, %v3367_v59  ;;  %v1525_v42 = vpop.f32.mrb[38].mxu0  ;;  %v1598_v26 = vpop.f32.mrb[54].mxu1 }
 0x3fa   :  { %v1526_v17 = vadd.f32 %v1525_v42, %v3361_v43  ;;  %v1599_v47 = vadd.f32 %v1598_v26, %v3363_v21  ;;  %v1527_v48 = vpop.f32.mrb[39].mxu0  ;;  %v1600_v49 = vpop.f32.mrb[55].mxu1  ;;  %v1631_v45 = vmax.f32 %v1522_v31, 0.0  ;;  %v1633_v52 = vmax.f32 %v1595_v34, 0.0 }
 0x3fb   :  { %v1528_v50 = vadd.f32 %v1527_v48, %v3365_v51  ;;  %v1601_v53 = vadd.f32 %v1600_v49, %v3367_v59  ;;  %v1632_v18 = vmax.f32 %v1524_v40, 0.0  ;;  %v1634_v57 = vmax.f32 %v1597_v41, 0.0 }
 0x3fc   :  { %v1635_v35 = vmax.f32 %v1526_v17, 0.0  ;;  %v1637_v55 = vmax.f32 %v1599_v47, 0.0 }
 0x3fd   :  { %v1636_v58 = vmax.f32 %v1528_v50, 0.0  ;;  %v1638_v38 = vmax.f32 %v1601_v53, 0.0 }
 0x3fe   :  { %v1659_v61 = vpack.c.bf16 %v1635_v35, %v1631_v45  ;;  %v1661_v56 = vpack.c.bf16 %v1637_v55, %v1633_v52 }
 0x3ff   :  { %v1660_v54 = vpack.c.bf16 %v1636_v58, %v1632_v18  ;;  %v1662_v23 = vpack.c.bf16 %v1638_v38, %v1634_v57  ;;  %v1531_v62 = vpop.f32.mrb[40].mxu0  ;;  %v1604_v63 = vpop.f32.mrb[56].mxu1 }
 0x400   :  { %v1532_v24 = vadd.f32 %v1531_v62, %v3361_v43  ;;  %v1605_v3 = vadd.f32 %v1604_v63, %v3363_v21  ;;  %v1533_v20 = vpop.f32.mrb[41].mxu0  ;;  %v1606_v44 = vpop.f32.mrb[57].mxu1 }
 0x401   :  { %v1534_v4 = vadd.f32 %v1533_v20, %v3365_v51  ;;  %v1607_v5 = vadd.f32 %v1606_v44, %v3367_v59  ;;  %v1535_v33 = vpop.f32.mrb[42].mxu0  ;;  %v1608_v7 = vpop.f32.mrb[58].mxu1  ;;  %1974 = vmatprep.mubr.bf16.mxu0 %v1660_v54  ;;  %2039 = vmatprep.mubr.bf16.mxu1 %v1662_v23 }
 0x402   :  { %v1536_v8 = vadd.f32 %v1535_v33, %v3361_v43  ;;  %v1609_v9 = vadd.f32 %v1608_v7, %v3363_v21  ;;  %v1537_v10 = vpop.f32.mrb[43].mxu0  ;;  %v1610_v60 = vpop.f32.mrb[59].mxu1  ;;  %1975 = vmatmul.mubr.bf16.gmra.mrb[52].mxu0 %v1659_v61  ;;  %2040 = vmatmul.mubr.bf16.gmra.mrb[68].mxu1 %v1661_v56  ;;  %v1639_v12 = vmax.f32 %v1532_v24, 0.0  ;;  %v1641_v13 = vmax.f32 %v1605_v3, 0.0 }
 0x403   :  { %v1538_v2 = vadd.f32 %v1537_v10, %v3365_v51  ;;  %v1611_v11 = vadd.f32 %v1610_v60, %v3367_v59  ;;  %v1640_v46 = vmax.f32 %v1534_v4, 0.0  ;;  %v1642_v27 = vmax.f32 %v1607_v5, 0.0 }
 0x404   :  { %v1643_v14 = vmax.f32 %v1536_v8, 0.0  ;;  %v1645_v19 = vmax.f32 %v1609_v9, 0.0 }
 0x405   :  { %v1644_v22 = vmax.f32 %v1538_v2, 0.0  ;;  %v1646_v25 = vmax.f32 %v1611_v11, 0.0 }
 0x406   :  { %v1663_v28 = vpack.c.bf16 %v1643_v14, %v1639_v12  ;;  %v1665_v30 = vpack.c.bf16 %v1645_v19, %v1641_v13 }
 0x407   :  { %v1664_v31 = vpack.c.bf16 %v1644_v22, %v1640_v46  ;;  %v1666_v34 = vpack.c.bf16 %v1646_v25, %v1642_v27  ;;  %v1541_v37 = vpop.f32.mrb[44].mxu0  ;;  %v1614_v6 = vpop.f32.mrb[60].mxu1 }
 0x408   :  { %v1542_v40 = vadd.f32 %v1541_v37, %v3361_v43  ;;  %v1615_v41 = vadd.f32 %v1614_v6, %v3363_v21  ;;  %v1543_v42 = vpop.f32.mrb[45].mxu0  ;;  %v1616_v26 = vpop.f32.mrb[61].mxu1 }
 0x409   :  { %v1544_v17 = vadd.f32 %v1543_v42, %v3365_v51  ;;  %v1617_v47 = vadd.f32 %v1616_v26, %v3367_v59  ;;  %v1545_v48 = vpop.f32.mrb[46].mxu0  ;;  %v1618_v49 = vpop.f32.mrb[62].mxu1  ;;  %1982 = vmatprep.mubr.bf16.mxu0 %v1664_v31  ;;  %2047 = vmatprep.mubr.bf16.mxu1 %v1666_v34 }
 0x40a   :  { %v1546_v50 = vadd.f32 %v1545_v48, %v3361_v43  ;;  %v1619_v53 = vadd.f32 %v1618_v49, %v3363_v21  ;;  %v1547_v45 = vpop.f32.mrb[47].mxu0  ;;  %v1620_v52 = vpop.f32.mrb[63].mxu1  ;;  %1983 = vmatmul.mubr.bf16.gmra.mrb[56].mxu0 %v1663_v28  ;;  %2048 = vmatmul.mubr.bf16.gmra.mrb[72].mxu1 %v1665_v30  ;;  %v1647_v18 = vmax.f32 %v1542_v40, 0.0  ;;  %v1649_v57 = vmax.f32 %v1615_v41, 0.0 }
 0x40b   :  { %v1548_v35 = vadd.f32 %v1547_v45, %v3365_v51  ;;  %v1621_v55 = vadd.f32 %v1620_v52, %v3367_v59  ;;  %v1648_v61 = vmax.f32 %v1544_v17, 0.0  ;;  %v1650_v56 = vmax.f32 %v1617_v47, 0.0  ;;  %v3404_v59 = vld [vmem:[%s3539_s11] ss:$0 sm:$0xff] }
 0x40c   :  { %v1651_v58 = vmax.f32 %v1546_v50, 0.0  ;;  %v1653_v38 = vmax.f32 %v1619_v53, 0.0 }
 0x40d   :  { %v1652_v54 = vmax.f32 %v1548_v35, 0.0  ;;  %v1654_v23 = vmax.f32 %v1621_v55, 0.0 }
 0x40e   :  { %v1667_v62 = vpack.c.bf16 %v1651_v58, %v1647_v18  ;;  %v1669_v43 = vpack.c.bf16 %v1653_v38, %v1649_v57 }
 0x40f   :  { %v1668_v63 = vpack.c.bf16 %v1652_v54, %v1648_v61  ;;  %v1670_v21 = vpack.c.bf16 %v1654_v23, %v1650_v56 }
 0x411   :  { %1990 = vmatprep.mubr.bf16.mxu0 %v1668_v63  ;;  %2055 = vmatprep.mubr.bf16.mxu1 %v1670_v21 }
 0x412   :  { %1991 = vmatmul.mubr.bf16.gmra.mrb[60].mxu0 %v1667_v62  ;;  %2056 = vmatmul.mubr.bf16.gmra.mrb[76].mxu1 %v1669_v43 }
 0x4cb   :  { %v2470_v24 = vpop.f32.mrb[48].mxu0  ;;  %v2510_v51 = vpop.f32.mrb[64].mxu1 }
 0x4cc   :  { %v2471_v3 = vpop.f32.mrb[49].mxu0  ;;  %v2511_v20 = vpop.f32.mrb[65].mxu1 }
 0x4cd   :  { %v2472_v44 = vadd.f32 %v2471_v3, %v2470_v24  ;;  %v2512_v4 = vadd.f32 %v2511_v20, %v2510_v51  ;;  %v2473_v5 = vpop.f32.mrb[50].mxu0  ;;  %v2513_v33 = vpop.f32.mrb[66].mxu1 }
 0x4ce   :  { %v2474_v7 = vpop.f32.mrb[51].mxu0  ;;  %v2514_v8 = vpop.f32.mrb[67].mxu1 }
 0x4cf   :  { %v1969_v9 = vadd.f32 %v2472_v44, %v3404_v59  ;;  %v2475_v10 = vadd.f32 %v2474_v7, %v2473_v5  ;;  %v2515_v60 = vadd.f32 %v2514_v8, %v2513_v33 }
 0x4d1   :  { %v2034_v2 = vadd.f32 %v2512_v4, %v1969_v9  ;;  %v1972_v11 = vadd.f32 %v2475_v10, %v3404_v59 }
 0x4d3   :  { %v2037_v12 = vadd.f32 %v2515_v60, %v1972_v11  ;;  %v3409_v13 = vadd.f32 %v2034_v2, %v3309_v29 }
 0x4d5   :  { %v2476_v14 = vpop.f32.mrb[52].mxu0  ;;  %v2516_v19 = vpop.f32.mrb[68].mxu1  ;;  %2074 = vadd.xlane.f32.xlu0 %v3409_v13  ;;  %v3413_v46 = vadd.f32 %v2037_v12, %v3312_v36  ;;  %v2098_v34 = vmul.f32 %v3409_v13, %v3409_v13 }
 0x4d6   :  { %v2477_v27 = vpop.f32.mrb[53].mxu0  ;;  %v2517_v22 = vpop.f32.mrb[69].mxu1 }
 0x4d7   :  { %v2478_v25 = vadd.f32 %v2477_v27, %v2476_v14  ;;  %v2518_v28 = vadd.f32 %v2517_v22, %v2516_v19  ;;  %v2479_v30 = vpop.f32.mrb[54].mxu0  ;;  %v2519_v31 = vpop.f32.mrb[70].mxu1  ;;  %2076 = vadd.xlane.f32.xlu1 %v3413_v46  ;;  %v2099_v36 = vmul.f32 %v3413_v46, %v3413_v46 }
 0x4d8   :  { %v2480_v29 = vpop.f32.mrb[55].mxu0  ;;  %v2520_v37 = vpop.f32.mrb[71].mxu1 }
 0x4d9   :  { %v1977_v6 = vadd.f32 %v2478_v25, %v3404_v59  ;;  %v2481_v40 = vadd.f32 %v2480_v29, %v2479_v30  ;;  %v2521_v41 = vadd.f32 %v2520_v37, %v2519_v31  ;;  %2106 = vadd.xlane.f32.xlu0 %v2098_v34 }
 0x4db   :  { %v2042_v42 = vadd.f32 %v2518_v28, %v1977_v6  ;;  %v1980_v26 = vadd.f32 %v2481_v40, %v3404_v59  ;;  %2108 = vadd.xlane.f32.xlu1 %v2099_v36 }
 0x4dd   :  { %v2045_v17 = vadd.f32 %v2521_v41, %v1980_v26  ;;  %v2482_v47 = vpop.f32.mrb[56].mxu0  ;;  %v2522_v48 = vpop.f32.mrb[72].mxu1  ;;  %v3423_v49 = vadd.f32 %v2042_v42, %v3325_v0 }
 0x4de   :  { %v2483_v50 = vpop.f32.mrb[57].mxu0  ;;  %v2523_v53 = vpop.f32.mrb[73].mxu1 }
 0x4df   :  { %v2484_v45 = vadd.f32 %v2483_v50, %v2482_v47  ;;  %v2524_v52 = vadd.f32 %v2523_v53, %v2522_v48  ;;  %v2485_v35 = vpop.f32.mrb[58].mxu0  ;;  %v2525_v55 = vpop.f32.mrb[74].mxu1  ;;  %2078 = vadd.xlane.f32.xlu0 %v3423_v49  ;;  %v3427_v18 = vadd.f32 %v2045_v17, %v3328_v1  ;;  %v2100_v0 = vmul.f32 %v3423_v49, %v3423_v49 }
 0x4e0   :  { %v2486_v57 = vpop.f32.mrb[59].mxu0  ;;  %v2526_v58 = vpop.f32.mrb[75].mxu1 }
 0x4e1   :  { %v1985_v38 = vadd.f32 %v2484_v45, %v3404_v59  ;;  %v2487_v61 = vadd.f32 %v2486_v57, %v2485_v35  ;;  %v2527_v56 = vadd.f32 %v2526_v58, %v2525_v55  ;;  %2080 = vadd.xlane.f32.xlu1 %v3427_v18  ;;  %v2101_v62 = vmul.f32 %v3427_v18, %v3427_v18 }
 0x4e3   :  { %v2050_v54 = vadd.f32 %v2524_v52, %v1985_v38  ;;  %v1988_v23 = vadd.f32 %v2487_v61, %v3404_v59  ;;  %2110 = vadd.xlane.f32.xlu0 %v2100_v0 }
 0x4e5   :  { %v2053_v1 = vadd.f32 %v2527_v56, %v1988_v23  ;;  %v2488_v43 = vpop.f32.mrb[60].mxu0  ;;  %v2528_v63 = vpop.f32.mrb[76].mxu1  ;;  %2112 = vadd.xlane.f32.xlu1 %v2101_v62  ;;  %v3437_v21 = vadd.f32 %v2050_v54, %v3339_v15 }
 0x4e6   :  { %v2489_v24 = vpop.f32.mrb[61].mxu0  ;;  %v2529_v51 = vpop.f32.mrb[77].mxu1 }
 0x4e7   :  { %v2490_v3 = vadd.f32 %v2489_v24, %v2488_v43  ;;  %v2530_v20 = vadd.f32 %v2529_v51, %v2528_v63  ;;  %v2491_v44 = vpop.f32.mrb[62].mxu0  ;;  %v2531_v4 = vpop.f32.mrb[78].mxu1  ;;  %2082 = vadd.xlane.f32.xlu0 %v3437_v21  ;;  %v3441_v5 = vadd.f32 %v2053_v1, %v3342_v16  ;;  %v2102_v15 = vmul.f32 %v3437_v21, %v3437_v21  ;;  %v3478_v24 = vld [vmem:[%s3534_s6] ss:$0 sm:$0xff]  ;;  %s2915_s6 = smov [#allocation11]  }
 0x4e8   :  { %v2492_v33 = vpop.f32.mrb[63].mxu0  ;;  %v2532_v7 = vpop.f32.mrb[79].mxu1  ;;  %s2227_s14 = sshll.u32 %s2915_s6, 4  ;;  %s2228_s14 = int_to_ptr.vmem [resolvable:$true] %s2227_s14 }
 0x4e9   :  { %v1993_v8 = vadd.f32 %v2490_v3, %v3404_v59  ;;  %v2493_v9 = vadd.f32 %v2492_v33, %v2491_v44  ;;  %v2533_v10 = vadd.f32 %v2532_v7, %v2531_v4  ;;  %2084 = vadd.xlane.f32.xlu1 %v3441_v5  ;;  %v2103_v11 = vmul.f32 %v3441_v5, %v3441_v5  ;;  %v3483_v7 = vld [vmem:[#allocation7] ss:$0 sm:$0xff]  ;;  %s2873_s26 = scalar_lea.vmem %s2228_s14, 1024  ;;  %p2878_p13 = scmp.lt.s32.totalorder %s2228_s14, %s2228_s14 }
 0x4ea   :  { %p2874_p12 = scmp.ne.s32.totalorder %s2228_s14, %s2873_s26  ;;  %p2879_p0 = scmp.lt.s32.totalorder %s2873_s26, %s2873_s26 }
 0x4eb   :  { %v2058_v60 = vadd.f32 %v2530_v20, %v1993_v8  ;;  %v1996_v2 = vadd.f32 %v2493_v9, %v3404_v59  ;;  %2114 = vadd.xlane.f32.xlu0 %v2102_v15 }
 0x4ec   :  { %p2880_p1 = por %p2879_p0, %p2878_p13 }
 0x4ed   :  { %v2061_v16 = vadd.f32 %v2533_v10, %v1996_v2  ;;  %2116 = vadd.xlane.f32.xlu1 %v2103_v11  ;;  %v3451_v12 = vadd.f32 %v2058_v60, %v3351_v32 }
 0x4ee   :  { %p2881_p2 = pnand %p2880_p1, %p2874_p12 }
 0x4ef   :  { %2086 = vadd.xlane.f32.xlu0 %v3451_v12  ;;  %v3455_v14 = vadd.f32 %v2061_v16, %v3354_v39  ;;  %v2104_v19 = vmul.f32 %v3451_v12, %v3451_v12 }
 0x4f1   :  { %2088 = vadd.xlane.f32.xlu1 %v3455_v14  ;;  %v2105_v59 = vmul.f32 %v3455_v14, %v3455_v14 }
 0x4f3   :  { %2118 = vadd.xlane.f32.xlu0 %v2104_v19 }
 0x4f5   :  { %2120 = vadd.xlane.f32.xlu1 %v2105_v59 }
 0x562   :  { %v2075_v27 = vpop.xlane.xlu0 %2074 }
 0x563   :  { %v2090_v22 = vmul.f32 0.0078125, %v2075_v27 }
 0x564   :  { %v2077_v25 = vpop.xlane.xlu1 %2076 }
 0x565   :  { %v2091_v32 = vmul.f32 0.0078125, %v2077_v25  ;;  %v2130_v30 = vmul.f32 %v2090_v22, %v2090_v22  ;;  %v2154_v62 = vsub.f32 %v3409_v13, %v2090_v22 }
 0x566   :  { %v2107_v28 = vpop.xlane.xlu0 %2106 }
 0x567   :  { %v2122_v31 = vmul.f32 0.0078125, %v2107_v28  ;;  %v2131_v39 = vmul.f32 %v2091_v32, %v2091_v32  ;;  %v2155_v44 = vsub.f32 %v3413_v46, %v2091_v32 }
 0x568   :  { %v2109_v34 = vpop.xlane.xlu1 %2108 }
 0x569   :  { %v2138_v29 = vsub.f32 %v2122_v31, %v2130_v30  ;;  %v2123_v37 = vmul.f32 0.0078125, %v2109_v34 }
 0x56b   :  { %v2146_v6 = vmax.f32 %v2138_v29, 0.0  ;;  %v2139_v40 = vsub.f32 %v2123_v37, %v2131_v39 }
 0x56c   :  { %v2079_v41 = vpop.xlane.xlu0 %2078 }
 0x56d   :  { %v2162_v36 = vadd.f32 1e-05, %v2146_v6  ;;  %v2147_v42 = vmax.f32 %v2139_v40, 0.0  ;;  %v3462_v26 = vmul.f32 0.0078125, %v2079_v41 }
 0x56e   :  { %v2081_v17 = vpop.xlane.xlu1 %2080 }
 0x56f   :  { %2747 = vrsqrt.f32 %v2162_v36  ;;  %v2163_v47 = vadd.f32 1e-05, %v2147_v42  ;;  %v3464_v48 = vmul.f32 0.0078125, %v2081_v17  ;;  %v2132_v53 = vmul.f32 %v3462_v26, %v3462_v26 }
 0x570   :  { %v2111_v50 = vpop.xlane.xlu0 %2110  ;;  %v2156_v29 = vsub.f32 %v3423_v49, %v3462_v26 }
 0x571   :  { %2749 = vrsqrt.f32 %v2163_v47  ;;  %v2124_v45 = vmul.f32 0.0078125, %v2111_v50  ;;  %v2133_v35 = vmul.f32 %v3464_v48, %v3464_v48  ;;  %v2157_v42 = vsub.f32 %v3427_v18, %v3464_v48 }
 0x572   :  { %v2113_v52 = vpop.xlane.xlu1 %2112 }
 0x573   :  { %v2140_v55 = vsub.f32 %v2124_v45, %v2132_v53  ;;  %v2125_v57 = vmul.f32 0.0078125, %v2113_v52 }
 0x574   :  { %v2083_v58 = vpop.xlane.xlu0 %2082 }
 0x575   :  { %v2148_v38 = vmax.f32 %v2140_v55, 0.0  ;;  %v2141_v61 = vsub.f32 %v2125_v57, %v2133_v35  ;;  %v3470_v56 = vmul.f32 0.0078125, %v2083_v58 }
 0x576   :  { %v2085_v0 = vpop.xlane.xlu1 %2084 }
 0x577   :  { %v2164_v54 = vadd.f32 1e-05, %v2148_v38  ;;  %v2149_v23 = vmax.f32 %v2141_v61, 0.0  ;;  %v3473_v1 = vmul.f32 0.0078125, %v2085_v0  ;;  %v2134_v3 = vmul.f32 %v3470_v56, %v3470_v56 }
 0x578   :  { %v2115_v43 = vpop.xlane.xlu0 %2114  ;;  %v2158_v18 = vsub.f32 %v3437_v21, %v3470_v56 }
 0x579   :  { %v2748_v63 = vpop.eup %2747  ;;  %2751 = vrsqrt.f32 %v2164_v54  ;;  %v2165_v51 = vadd.f32 1e-05, %v2149_v23  ;;  %v2126_v20 = vmul.f32 0.0078125, %v2115_v43  ;;  %v2135_v8 = vmul.f32 %v3473_v1, %v3473_v1 }
 0x57a   :  { %v2178_v4 = vmul.f32 %v2748_v63, %v2154_v62  ;;  %v2117_v33 = vpop.xlane.xlu1 %2116  ;;  %v2159_v38 = vsub.f32 %v3441_v5, %v3473_v1 }
 0x57b   :  { %v2750_v13 = vpop.eup %2749  ;;  %2753 = vrsqrt.f32 %v2165_v51  ;;  %v2142_v9 = vsub.f32 %v2126_v20, %v2134_v3  ;;  %v2127_v10 = vmul.f32 0.0078125, %v2117_v33 }
 0x57c   :  { %v2192_v15 = vmul.f32 %v3478_v24, %v2178_v4  ;;  %v2179_v60 = vmul.f32 %v2750_v13, %v2155_v44  ;;  %v2087_v2 = vpop.xlane.xlu0 %2086 }
 0x57d   :  { %v2150_v11 = vmax.f32 %v2142_v9, 0.0  ;;  %v2143_v16 = vsub.f32 %v2127_v10, %v2135_v8  ;;  %v2096_v19 = vmul.f32 0.0078125, %v2087_v2 }
 0x57e   :  { %v2206_v46 = vadd.f32 %v3483_v7, %v2192_v15  ;;  %v2193_v59 = vmul.f32 %v3478_v24, %v2179_v60  ;;  %v2089_v27 = vpop.xlane.xlu1 %2088 }
 0x57f   :  { %v2166_v22 = vadd.f32 1e-05, %v2150_v11  ;;  %v2151_v25 = vmax.f32 %v2143_v16, 0.0  ;;  %v2097_v28 = vmul.f32 0.0078125, %v2089_v27  ;;  %v2136_v34 = vmul.f32 %v2096_v19, %v2096_v19 }
 0x580   :  { %2214 = vst [vmem:[#allocation11] sm:$0xff] %v2206_v46  ;;  %v2207_v32 = vadd.f32 %v3483_v7, %v2193_v59  ;;  %v2119_v30 = vpop.xlane.xlu0 %2118  ;;  %v2160_v21 = vsub.f32 %v3451_v12, %v2096_v19 }
 0x581   :  { %2755 = vrsqrt.f32 %v2166_v22  ;;  %v2167_v31 = vadd.f32 1e-05, %v2151_v25  ;;  %v2128_v39 = vmul.f32 0.0078125, %v2119_v30  ;;  %v2137_v40 = vmul.f32 %v2097_v28, %v2097_v28 }
 0x582   :  { %2215 = vst [vmem:[#allocation11 + $0x8] sm:$0xff] %v2207_v32  ;;  %v2121_v37 = vpop.xlane.xlu1 %2120  ;;  %v2161_v51 = vsub.f32 %v3455_v14, %v2097_v28 }
 0x583   :  { %v2752_v6 = vpop.eup %2751  ;;  %2757 = vrsqrt.f32 %v2167_v31  ;;  %v2144_v41 = vsub.f32 %v2128_v39, %v2136_v34  ;;  %v2129_v36 = vmul.f32 0.0078125, %v2121_v37 }
 0x584   :  { %v2180_v17 = vmul.f32 %v2752_v6, %v2156_v29 }
 0x585   :  { %v2754_v47 = vpop.eup %2753  ;;  %v2152_v50 = vmax.f32 %v2144_v41, 0.0  ;;  %v2145_v53 = vsub.f32 %v2129_v36, %v2137_v40 }
 0x586   :  { %v2194_v45 = vmul.f32 %v3478_v24, %v2180_v17  ;;  %v2181_v52 = vmul.f32 %v2754_v47, %v2157_v42 }
 0x587   :  { %v2168_v35 = vadd.f32 1e-05, %v2152_v50  ;;  %v2153_v55 = vmax.f32 %v2145_v53, 0.0 }
 0x588   :  { %v2208_v49 = vadd.f32 %v3483_v7, %v2194_v45  ;;  %v2195_v26 = vmul.f32 %v3478_v24, %v2181_v52 }
 0x589   :  { %2759 = vrsqrt.f32 %v2168_v35  ;;  %v2169_v57 = vadd.f32 1e-05, %v2153_v55 }
 0x58a   :  { %2216 = vst [vmem:[#allocation11 + $0x10] sm:$0xff] %v2208_v49  ;;  %v2209_v58 = vadd.f32 %v3483_v7, %v2195_v26 }
 0x58b   :  { %v2756_v48 = vpop.eup %2755  ;;  %2761 = vrsqrt.f32 %v2169_v57 }
 0x58c   :  { %2217 = vst [vmem:[#allocation11 + $0x18] sm:$0xff] %v2209_v58  ;;  %v2182_v61 = vmul.f32 %v2756_v48, %v2158_v18 }
 0x58d   :  { %v2758_v0 = vpop.eup %2757 }
 0x58e   :  { %v2196_v54 = vmul.f32 %v3478_v24, %v2182_v61  ;;  %v2183_v23 = vmul.f32 %v2758_v0, %v2159_v38 }
 0x590   :  { %v2210_v62 = vadd.f32 %v3483_v7, %v2196_v54  ;;  %v2197_v43 = vmul.f32 %v3478_v24, %v2183_v23 }
 0x592   :  { %2218 = vst [vmem:[#allocation11 + $0x20] sm:$0xff] %v2210_v62  ;;  %v2211_v63 = vadd.f32 %v3483_v7, %v2197_v43 }
 0x593   :  { %v2760_v56 = vpop.eup %2759 }
 0x594   :  { %2219 = vst [vmem:[#allocation11 + $0x28] sm:$0xff] %v2211_v63  ;;  %v2184_v3 = vmul.f32 %v2760_v56, %v2160_v21 }
 0x595   :  { %v2762_v5 = vpop.eup %2761 }
 0x596   :  { %v2198_v1 = vmul.f32 %v3478_v24, %v2184_v3  ;;  %v2185_v20 = vmul.f32 %v2762_v5, %v2161_v51 }
 0x598   :  { %v2212_v44 = vadd.f32 %v3483_v7, %v2198_v1  ;;  %v2199_v4 = vmul.f32 %v3478_v24, %v2185_v20 }
 0x59a   :  { %2220 = vst [vmem:[#allocation11 + $0x30] sm:$0xff] %v2212_v44  ;;  %v2213_v33 = vadd.f32 %v3483_v7, %v2199_v4 }
 0x59c   :  { %2221 = vst [vmem:[#allocation11 + $0x38] sm:$0xff] %v2213_v33 }
 0x59d   :  { %2884 = shalt.err (!%p2881_p2)
}
 0x59e   :  { %s2885_s24 = scalar_lea.hbm %s3540_s12, 1024 }
 0x59f   :  { %p2886_p3 = scmp.ne.s32.totalorder %s3540_s12, %s2885_s24  ;;  %p2889_p4 = scmp.lt.u32.totalorder %s2885_s24, %s3540_s12 }
 0x5a1   :  { %p2891_p5 = pnand %p2889_p4, %p2886_p3 }
 0x5a3   :  { %2894 = shalt.err (!%p2891_p5)
}
 0x5a4   :  { %2233 = dma.vmem_to_hbm [thread:$0]  %s2228_s14, 1024, %s3540_s12, [#allocation4], %s2905_s15, %s2905_s15, %s2906_s16  }
 0x5a5   :  { %2901 = dma.done.wait [#allocation4], 1024  }
 0x5a6   :  { %2902 = vsyncadd [#allocation4], 4294966272 }
 0x5a7   :  { %2237 = vsyncpa [#allocation3], 1 }
 0x5a8   :  { %2238 = vsyncpa [#allocation6], 1 }
 0x5a9   :  { %2239 = vsyncpa [#allocation9], 1 }
 0x5aa   :  { %2240 = vsyncpa [#allocation4], 1 }

</bundles_post_ra>
